<compile_context>
chip_gen: v5e
topology: v5e:2x2
jax: 0.10.0
libtpu: 0.0.40
codegen_flags: <defaults>
</compile_context>

<pallas_src>
import jax
import jax.numpy as jnp
from jax.experimental import pallas as pl
from jax.experimental.pallas import tpu as pltpu

# ---- problem sizes implied by the module (fc1 = Linear(64*75, 128) => length 150) ----
BATCH = 2
IN_CH = 4
SEQ_LEN = 150
POOL_LEN = SEQ_LEN // 2          # 75
CONV_CH = 64
HIDDEN = 128
NUM_CLASSES = 10
KW = 3                            # conv kernel size
TAPS = KW * IN_CH                 # 12

# fc1 K dimension padded so it is a multiple of 128 lanes: 76*64 = 4864 = 38*128
POOL_PAD = 76
K_PAD = POOL_PAD * CONV_CH        # 4864
N_PAIRS = POOL_PAD // 2           # 38 flattened 128-lane chunks (pairs of pooled steps)
NK = 2                            # fc1 K tiles (weight stream double-buffered by Pallas)
TK = K_PAD // NK                  # 2432 = 19*128
PAIRS_PER_TILE = N_PAIRS // NK    # 19

# conv/pool matmul geometry: rows = (pooled-pair u, batch b); padded to 40 pairs so the
# even/odd halves split on an 8-row sublane-tile boundary (80 rows per parity half).
PAIRS_M = 40
ROWS_HALF = PAIRS_M * BATCH       # 80
ROWS_ALL = 2 * ROWS_HALF          # 160
RAW_PAD = 4 * PAIRS_M             # 160 raw conv time steps after zero padding


# --------------------------------- fused kernel --------------------------------------
def fused_kernel(aeo_ref, wp_ref, cb_ref, w1_ref, b1_ref, w2_ref, b2_ref,
                 o_ref, flat_sc, h_sc):
    j = pl.program_id(0)

    # ---- step 0: conv1d + ReLU + MaxPool1d(2), flatten into VMEM scratch ----
    @pl.when(j == 0)
    def _conv_pool_flatten():
        # One MXU matmul covers every (batch, raw time) conv output.
        # Rows [0:80) hold even raw times, rows [80:160) odd raw times; lanes
        # [0:64)/[64:128) hold two consecutive pooled slots (block-diag weight).
        conv = jnp.dot(aeo_ref[...], wp_ref[...],
                       preferred_element_type=jnp.float32)            # (160, 128)
        even = conv[:ROWS_HALF]
        odd = conv[ROWS_HALF:]
        # maxpool(relu(conv + b)) == relu(max(even, odd) + b): bias/relu applied once.
        pooled = jnp.maximum(jnp.maximum(even, odd) + cb_ref[...], 0.0)  # (80, 128)
        pooled_bf = pooled.astype(jnp.bfloat16)     # one whole-tile cast (hoisted)
        # Row (u*BATCH + b), lane (v*64 + c) == pooled[b, t=2u+v, c]  ==  flat idx t*64+c,
        # so each row pair is a ready-made 128-lane chunk of the fc1 K order.
        for u in range(N_PAIRS):                                  # 38, fully unrolled
            kt, kc = divmod(u, PAIRS_PER_TILE)
            flat_sc[kt, :, kc * 128:(kc + 1) * 128] = (
                pooled_bf[u * BATCH:(u + 1) * BATCH, :])
        # fc1 bias folded into the accumulator init: epilogue becomes relu + fc2 only.
        h_sc[...] = jnp.broadcast_to(b1_ref[...], (BATCH, HIDDEN))

    # ---- every step: fc1 partial product for this K tile (bf16 x bf16 -> f32 acc) ----
    h_sc[...] += jnp.dot(flat_sc[j], w1_ref[...],
                         preferred_element_type=jnp.float32)

    # ---- last step: ReLU + (dropout = identity) + fc2, single tiny store ----
    @pl.when(j == pl.num_programs(0) - 1)
    def _head():
        h = jnp.maximum(h_sc[...], 0.0)
        # TODO(synk): nn.Dropout(0.5) is identity in eval/inference mode; no RNG mask.
        o_ref[...] = jnp.dot(h, w2_ref[...],
                             preferred_element_type=jnp.float32) + b2_ref[...]


def _fused_call(aeo, wp, cb, w1k, b1, w2, b2):
    flops = 2 * (ROWS_ALL * (2 * TAPS) * (2 * CONV_CH)
                 + BATCH * K_PAD * HIDDEN
                 + BATCH * HIDDEN * NUM_CLASSES)
    bytes_accessed = (K_PAD * HIDDEN * 2                 # bf16 fc1 weight stream
                      + ROWS_ALL * (2 * TAPS) * 4
                      + (2 * TAPS) * (2 * CONV_CH) * 4
                      + (2 * CONV_CH + HIDDEN + HIDDEN * NUM_CLASSES
                         + NUM_CLASSES + BATCH * NUM_CLASSES) * 4)
    return pl.pallas_call(
        fused_kernel,
        out_shape=jax.ShapeDtypeStruct((BATCH, NUM_CLASSES), jnp.float32),
        grid_spec=pltpu.PrefetchScalarGridSpec(
            num_scalar_prefetch=0,
            grid=(NK,),
            in_specs=[
                pl.BlockSpec((ROWS_ALL, 2 * TAPS), lambda j: (0, 0)),       # conv LHS
                pl.BlockSpec((2 * TAPS, 2 * CONV_CH), lambda j: (0, 0)),    # conv weight
                pl.BlockSpec((1, 2 * CONV_CH), lambda j: (0, 0)),           # conv bias x2
                pl.BlockSpec((TK, HIDDEN), lambda j: (j, 0)),               # fc1 K tile
                pl.BlockSpec((1, HIDDEN), lambda j: (0, 0)),                # fc1 bias
                pl.BlockSpec((HIDDEN, NUM_CLASSES), lambda j: (0, 0)),      # fc2 weight
                pl.BlockSpec((1, NUM_CLASSES), lambda j: (0, 0)),           # fc2 bias
            ],
            out_specs=pl.BlockSpec((BATCH, NUM_CLASSES), lambda j: (0, 0)),
            scratch_shapes=[
                pltpu.VMEM((NK, BATCH, TK), jnp.bfloat16),   # flattened pooled activations
                pltpu.VMEM((BATCH, HIDDEN), jnp.float32),    # fc1 accumulator
            ],
        ),
        compiler_params=pltpu.CompilerParams(
            dimension_semantics=("arbitrary",),              # K-reduction grid axis
        ),
        cost_estimate=pl.CostEstimate(flops=flops, transcendentals=0,
                                      bytes_accessed=bytes_accessed),
    )(aeo, wp, cb, w1k, b1, w2, b2)


# ------------------------- one-time parameter re-layout ------------------------------
def prepare_params(params):
    """Hoisted weight re-layouts (done once, NOT per forward call)."""
    conv_w, conv_b, fc1_w, fc1_b, fc2_w, fc2_b = params

    # conv taps stacked as (tap*IN_CH + in_ch, out_ch)
    wstack = jnp.transpose(conv_w, (2, 1, 0)).reshape(TAPS, CONV_CH)        # (12, 64)
    z = jnp.zeros_like(wstack)
    # block-diagonal pair weight: lanes [0:64) even pooled slot, [64:128) odd pooled slot
    wp = jnp.concatenate(
        [jnp.concatenate([wstack, z], axis=1),
         jnp.concatenate([z, wstack], axis=1)], axis=0)                     # (24, 128)
    cb = jnp.concatenate([conv_b, conv_b]).reshape(1, 2 * CONV_CH)          # (1, 128)

    # fc1: PyTorch flat index is c*75 + t; kernel flat index is t*64 + c, t padded to 76.
    w1k = (fc1_w.reshape(HIDDEN, CONV_CH, POOL_LEN)      # [h, c, t]
           .transpose(2, 1, 0))                          # [t, c, h]
    w1k = jnp.pad(w1k, ((0, POOL_PAD - POOL_LEN), (0, 0), (0, 0)))
    w1k = w1k.reshape(K_PAD, HIDDEN).astype(jnp.bfloat16)                   # (4864, 128)

    b1 = fc1_b.reshape(1, HIDDEN).astype(jnp.float32)
    w2 = fc2_w.T.astype(jnp.float32)                                        # (128, 10)
    b2 = fc2_b.reshape(1, NUM_CLASSES).astype(jnp.float32)
    return (wp, cb, w1k, b1, w2, b2)


# ------------------------------- full forward pass ------------------------------------
@jax.jit
def force1dcnn_forward(x, prepped):
    """x: (BATCH, IN_CH, SEQ_LEN) float32 (PyTorch NCW convention)."""
    wp, cb, w1k, b1, w2, b2 = prepped

    # Lightweight per-call layout glue on the tiny input only (~15 KB total).
    x_t = jnp.transpose(x, (0, 2, 1))                              # (B, 150, 4)
    x_pad = jnp.pad(x_t, ((0, 0), (1, 1), (0, 0)))                 # conv padding=1
    win = jnp.concatenate([x_pad[:, :SEQ_LEN],
                           x_pad[:, 1:SEQ_LEN + 1],
                           x_pad[:, 2:SEQ_LEN + 2]], axis=-1)      # (B, 150, 12) 3-tap windows
    win = jnp.pad(win, ((0, 0), (0, RAW_PAD - SEQ_LEN), (0, 0)))   # pad raw time to 160

    # Conv matmul LHS rows = (pooled-pair u, batch b); 24 columns hold the windows of
    # two raw time steps (the even or odd member of each pooled pair, resp.).
    ae = jnp.concatenate([win[:, 0::4, :], win[:, 2::4, :]], axis=-1)   # (B, 40, 24)
    ao = jnp.concatenate([win[:, 1::4, :], win[:, 3::4, :]], axis=-1)   # (B, 40, 24)
    ae = jnp.transpose(ae, (1, 0, 2)).reshape(ROWS_HALF, 2 * TAPS)
    ao = jnp.transpose(ao, (1, 0, 2)).reshape(ROWS_HALF, 2 * TAPS)
    aeo = jnp.concatenate([ae, ao], axis=0)                             # (160, 24)

    return _fused_call(aeo, wp, cb, w1k, b1, w2, b2)


# --------------------------- reference (pure JAX / XLA) --------------------------------
def reference_forward(x, params):
    conv_w, conv_b, fc1_w, fc1_b, fc2_w, fc2_b = params
    y = jax.lax.conv_general_dilated(
        x, conv_w, window_strides=(1,), padding=((1, 1),),
        dimension_numbers=("NCH", "OIH", "NCH"))
    y = y + conv_b[None, :, None]
    y = jnp.maximum(y, 0.0)
    y = jnp.max(y.reshape(BATCH, CONV_CH, POOL_LEN, 2), axis=-1)     # MaxPool1d(2)
    flat = y.reshape(BATCH, CONV_CH * POOL_LEN)                      # PyTorch flatten order
    h = jnp.maximum(flat @ fc1_w.T + fc1_b, 0.0)
    return h @ fc2_w.T + fc2_b


if __name__ == "__main__":
    key = jax.random.PRNGKey(0)
    kx, k1, k2, k3, k4, k5, k6 = jax.random.split(key, 7)

    # deterministic synthetic parameters (PyTorch-shaped)
    conv_w = 0.05 * jax.random.normal(k1, (CONV_CH, IN_CH, KW), jnp.float32)
    conv_b = 0.05 * jax.random.normal(k2, (CONV_CH,), jnp.float32)
    fc1_w = 0.02 * jax.random.normal(k3, (HIDDEN, CONV_CH * POOL_LEN), jnp.float32)
    fc1_b = 0.02 * jax.random.normal(k4, (HIDDEN,), jnp.float32)
    fc2_w = 0.05 * jax.random.normal(k5, (NUM_CLASSES, HIDDEN), jnp.float32)
    fc2_b = 0.05 * jax.random.normal(k6, (NUM_CLASSES,), jnp.float32)
    params = (conv_w, conv_b, fc1_w, fc1_b, fc2_w, fc2_b)

    x = jax.random.normal(kx, (BATCH, IN_CH, SEQ_LEN), jnp.float32)

    # one-time, hoisted weight re-layout (not part of the per-call path)
    prepped = jax.block_until_ready(prepare_params(params))

    out = jax.block_until_ready(force1dcnn_forward(x, prepped))
    ref = jax.block_until_ready(reference_forward(x, params))

    assert out.shape == (BATCH, NUM_CLASSES), out.shape
    # tolerance slightly relaxed vs f32 because fc1 weights/activations are bf16 (K=4800)
    assert jnp.allclose(out, ref, rtol=2e-2, atol=2e-3), (
        f"max abs err {jnp.max(jnp.abs(out - ref))}")
    print("KERNEL_OK")
</pallas_src>

<mosaic_0001>
module attributes {stable_mosaic.version = 11 : i64} {
  func.func @fused_kernel(%arg0: i32, %arg1: memref<160x24xf32, #tpu.memory_space<vmem>>, %arg2: memref<24x128xf32, #tpu.memory_space<vmem>>, %arg3: memref<1x128xf32, #tpu.memory_space<vmem>>, %arg4: memref<2432x128xbf16, #tpu.memory_space<vmem>>, %arg5: memref<1x128xf32, #tpu.memory_space<vmem>>, %arg6: memref<128x10xf32, #tpu.memory_space<vmem>>, %arg7: memref<1x10xf32, #tpu.memory_space<vmem>>, %arg8: memref<2x10xf32, #tpu.memory_space<vmem>>, %arg9: memref<2x2x2432xbf16, #tpu.memory_space<vmem>>, %arg10: memref<2x128xf32, #tpu.memory_space<vmem>>) attributes {dimension_semantics = [#tpu.dimension_semantics<arbitrary>], iteration_bounds = array<i64: 2>, scalar_prefetch = 0 : i64, scratch_operands = 2 : i64, tpu.core_type = #tpu.core_type<tc>, window_params = [{pipeline_mode = #tpu.pipeline_mode<synchronous>, transform_indices = @transform_0, window_bounds = array<i64: 160, 24>}, {pipeline_mode = #tpu.pipeline_mode<synchronous>, transform_indices = @transform_1, window_bounds = array<i64: 24, 128>}, {pipeline_mode = #tpu.pipeline_mode<synchronous>, transform_indices = @transform_2, window_bounds = array<i64: 1, 128>}, {transform_indices = @transform_3, window_bounds = array<i64: 2432, 128>}, {pipeline_mode = #tpu.pipeline_mode<synchronous>, transform_indices = @transform_4, window_bounds = array<i64: 1, 128>}, {pipeline_mode = #tpu.pipeline_mode<synchronous>, transform_indices = @transform_5, window_bounds = array<i64: 128, 10>}, {pipeline_mode = #tpu.pipeline_mode<synchronous>, transform_indices = @transform_6, window_bounds = array<i64: 1, 10>}, {pipeline_mode = #tpu.pipeline_mode<synchronous>, transform_indices = @transform_7, window_bounds = array<i64: 2, 10>}]} {
    %c0_i32 = arith.constant 0 : i32
    %0 = arith.cmpi eq, %arg0, %c0_i32 : i32
    %1 = arith.extui %0 : i1 to i32
    %c0_i32_0 = arith.constant 0 : i32
    %2 = arith.cmpi ne, %1, %c0_i32_0 : i32
    scf.if %2 {
      %c0_9 = arith.constant 0 : index
      %c0_10 = arith.constant 0 : index
      %14 = vector.load %arg1[%c0_9, %c0_10] : memref<160x24xf32, #tpu.memory_space<vmem>>, vector<160x24xf32>
      %c0_11 = arith.constant 0 : index
      %c0_12 = arith.constant 0 : index
      %15 = vector.load %arg2[%c0_11, %c0_12] : memref<24x128xf32, #tpu.memory_space<vmem>>, vector<24x128xf32>
      %cst_13 = arith.constant dense<0.000000e+00> : vector<160x128xf32>
      %16 = tpu.matmul %14, %15, %cst_13 {dimension_numbers = #tpu.dot_dimension_numbers<[1], [0], [0], [1], [0, 0, 1, 1], [], []>} : vector<160x24xf32>, vector<24x128xf32>, vector<160x128xf32> -> vector<160x128xf32>
      %17 = vector.extract_strided_slice %16 {offsets = [0, 0], sizes = [80, 128], strides = [1, 1]} : vector<160x128xf32> to vector<80x128xf32>
      %18 = vector.extract_strided_slice %16 {offsets = [80, 0], sizes = [80, 128], strides = [1, 1]} : vector<160x128xf32> to vector<80x128xf32>
      %19 = arith.maximumf %17, %18 : vector<80x128xf32>
      %c0_14 = arith.constant 0 : index
      %c0_15 = arith.constant 0 : index
      %20 = vector.load %arg3[%c0_14, %c0_15] : memref<1x128xf32, #tpu.memory_space<vmem>>, vector<1x128xf32>
      %21 = vector.broadcast %20 : vector<1x128xf32> to vector<80x128xf32>
      %22 = arith.addf %19, %21 : vector<80x128xf32>
      %cst_16 = arith.constant 0.000000e+00 : f32
      %23 = vector.broadcast %cst_16 : f32 to vector<80x128xf32>
      %24 = arith.maximumf %22, %23 : vector<80x128xf32>
      %25 = arith.truncf %24 : vector<80x128xf32> to vector<80x128xbf16>
      %26 = vector.extract_strided_slice %25 {offsets = [0, 0], sizes = [2, 128], strides = [1, 1]} : vector<80x128xbf16> to vector<2x128xbf16>
      %c0_17 = arith.constant 0 : index
      %c0_18 = arith.constant 0 : index
      %c0_19 = arith.constant 0 : index
      %27 = vector.load %arg9[%c0_17, %c0_18, %c0_19] : memref<2x2x2432xbf16, #tpu.memory_space<vmem>>, vector<1x2x128xbf16>
      %28 = vector.shape_cast %27 : vector<1x2x128xbf16> to vector<2x128xbf16>
      %29 = vector.shape_cast %26 : vector<2x128xbf16> to vector<1x2x128xbf16>
      tpu.vector_store %arg9[%c0_17, %c0_18, %c0_19], %29 {strides = array<i32>} : memref<2x2x2432xbf16, #tpu.memory_space<vmem>>, vector<1x2x128xbf16>,
      %30 = vector.extract_strided_slice %25 {offsets = [2, 0], sizes = [2, 128], strides = [1, 1]} : vector<80x128xbf16> to vector<2x128xbf16>
      %c0_20 = arith.constant 0 : index
      %c0_21 = arith.constant 0 : index
      %c128 = arith.constant 128 : index
      %31 = vector.load %arg9[%c0_20, %c0_21, %c128] : memref<2x2x2432xbf16, #tpu.memory_space<vmem>>, vector<1x2x128xbf16>
      %32 = vector.shape_cast %31 : vector<1x2x128xbf16> to vector<2x128xbf16>
      %33 = vector.shape_cast %30 : vector<2x128xbf16> to vector<1x2x128xbf16>
      tpu.vector_store %arg9[%c0_20, %c0_21, %c128], %33 {strides = array<i32>} : memref<2x2x2432xbf16, #tpu.memory_space<vmem>>, vector<1x2x128xbf16>,
      %34 = vector.extract_strided_slice %25 {offsets = [4, 0], sizes = [2, 128], strides = [1, 1]} : vector<80x128xbf16> to vector<2x128xbf16>
      %c0_22 = arith.constant 0 : index
      %c0_23 = arith.constant 0 : index
      %c256 = arith.constant 256 : index
      %35 = vector.load %arg9[%c0_22, %c0_23, %c256] : memref<2x2x2432xbf16, #tpu.memory_space<vmem>>, vector<1x2x128xbf16>
      %36 = vector.shape_cast %35 : vector<1x2x128xbf16> to vector<2x128xbf16>
      %37 = vector.shape_cast %34 : vector<2x128xbf16> to vector<1x2x128xbf16>
      tpu.vector_store %arg9[%c0_22, %c0_23, %c256], %37 {strides = array<i32>} : memref<2x2x2432xbf16, #tpu.memory_space<vmem>>, vector<1x2x128xbf16>,
      %38 = vector.extract_strided_slice %25 {offsets = [6, 0], sizes = [2, 128], strides = [1, 1]} : vector<80x128xbf16> to vector<2x128xbf16>
      %c0_24 = arith.constant 0 : index
      %c0_25 = arith.constant 0 : index
      %c384 = arith.constant 384 : index
      %39 = vector.load %arg9[%c0_24, %c0_25, %c384] : memref<2x2x2432xbf16, #tpu.memory_space<vmem>>, vector<1x2x128xbf16>
      %40 = vector.shape_cast %39 : vector<1x2x128xbf16> to vector<2x128xbf16>
      %41 = vector.shape_cast %38 : vector<2x128xbf16> to vector<1x2x128xbf16>
      tpu.vector_store %arg9[%c0_24, %c0_25, %c384], %41 {strides = array<i32>} : memref<2x2x2432xbf16, #tpu.memory_space<vmem>>, vector<1x2x128xbf16>,
      %42 = vector.extract_strided_slice %25 {offsets = [8, 0], sizes = [2, 128], strides = [1, 1]} : vector<80x128xbf16> to vector<2x128xbf16>
      %c0_26 = arith.constant 0 : index
      %c0_27 = arith.constant 0 : index
      %c512 = arith.constant 512 : index
      %43 = vector.load %arg9[%c0_26, %c0_27, %c512] : memref<2x2x2432xbf16, #tpu.memory_space<vmem>>, vector<1x2x128xbf16>
      %44 = vector.shape_cast %43 : vector<1x2x128xbf16> to vector<2x128xbf16>
      %45 = vector.shape_cast %42 : vector<2x128xbf16> to vector<1x2x128xbf16>
      tpu.vector_store %arg9[%c0_26, %c0_27, %c512], %45 {strides = array<i32>} : memref<2x2x2432xbf16, #tpu.memory_space<vmem>>, vector<1x2x128xbf16>,
      %46 = vector.extract_strided_slice %25 {offsets = [10, 0], sizes = [2, 128], strides = [1, 1]} : vector<80x128xbf16> to vector<2x128xbf16>
      %c0_28 = arith.constant 0 : index
      %c0_29 = arith.constant 0 : index
      %c640 = arith.constant 640 : index
      %47 = vector.load %arg9[%c0_28, %c0_29, %c640] : memref<2x2x2432xbf16, #tpu.memory_space<vmem>>, vector<1x2x128xbf16>
      %48 = vector.shape_cast %47 : vector<1x2x128xbf16> to vector<2x128xbf16>
      %49 = vector.shape_cast %46 : vector<2x128xbf16> to vector<1x2x128xbf16>
      tpu.vector_store %arg9[%c0_28, %c0_29, %c640], %49 {strides = array<i32>} : memref<2x2x2432xbf16, #tpu.memory_space<vmem>>, vector<1x2x128xbf16>,
      %50 = vector.extract_strided_slice %25 {offsets = [12, 0], sizes = [2, 128], strides = [1, 1]} : vector<80x128xbf16> to vector<2x128xbf16>
      %c0_30 = arith.constant 0 : index
      %c0_31 = arith.constant 0 : index
      %c768 = arith.constant 768 : index
      %51 = vector.load %arg9[%c0_30, %c0_31, %c768] : memref<2x2x2432xbf16, #tpu.memory_space<vmem>>, vector<1x2x128xbf16>
      %52 = vector.shape_cast %51 : vector<1x2x128xbf16> to vector<2x128xbf16>
      %53 = vector.shape_cast %50 : vector<2x128xbf16> to vector<1x2x128xbf16>
      tpu.vector_store %arg9[%c0_30, %c0_31, %c768], %53 {strides = array<i32>} : memref<2x2x2432xbf16, #tpu.memory_space<vmem>>, vector<1x2x128xbf16>,
      %54 = vector.extract_strided_slice %25 {offsets = [14, 0], sizes = [2, 128], strides = [1, 1]} : vector<80x128xbf16> to vector<2x128xbf16>
      %c0_32 = arith.constant 0 : index
      %c0_33 = arith.constant 0 : index
      %c896 = arith.constant 896 : index
      %55 = vector.load %arg9[%c0_32, %c0_33, %c896] : memref<2x2x2432xbf16, #tpu.memory_space<vmem>>, vector<1x2x128xbf16>
      %56 = vector.shape_cast %55 : vector<1x2x128xbf16> to vector<2x128xbf16>
      %57 = vector.shape_cast %54 : vector<2x128xbf16> to vector<1x2x128xbf16>
      tpu.vector_store %arg9[%c0_32, %c0_33, %c896], %57 {strides = array<i32>} : memref<2x2x2432xbf16, #tpu.memory_space<vmem>>, vector<1x2x128xbf16>,
      %58 = vector.extract_strided_slice %25 {offsets = [16, 0], sizes = [2, 128], strides = [1, 1]} : vector<80x128xbf16> to vector<2x128xbf16>
      %c0_34 = arith.constant 0 : index
      %c0_35 = arith.constant 0 : index
      %c1024 = arith.constant 1024 : index
      %59 = vector.load %arg9[%c0_34, %c0_35, %c1024] : memref<2x2x2432xbf16, #tpu.memory_space<vmem>>, vector<1x2x128xbf16>
      %60 = vector.shape_cast %59 : vector<1x2x128xbf16> to vector<2x128xbf16>
      %61 = vector.shape_cast %58 : vector<2x128xbf16> to vector<1x2x128xbf16>
      tpu.vector_store %arg9[%c0_34, %c0_35, %c1024], %61 {strides = array<i32>} : memref<2x2x2432xbf16, #tpu.memory_space<vmem>>, vector<1x2x128xbf16>,
      %62 = vector.extract_strided_slice %25 {offsets = [18, 0], sizes = [2, 128], strides = [1, 1]} : vector<80x128xbf16> to vector<2x128xbf16>
      %c0_36 = arith.constant 0 : index
      %c0_37 = arith.constant 0 : index
      %c1152 = arith.constant 1152 : index
      %63 = vector.load %arg9[%c0_36, %c0_37, %c1152] : memref<2x2x2432xbf16, #tpu.memory_space<vmem>>, vector<1x2x128xbf16>
      %64 = vector.shape_cast %63 : vector<1x2x128xbf16> to vector<2x128xbf16>
      %65 = vector.shape_cast %62 : vector<2x128xbf16> to vector<1x2x128xbf16>
      tpu.vector_store %arg9[%c0_36, %c0_37, %c1152], %65 {strides = array<i32>} : memref<2x2x2432xbf16, #tpu.memory_space<vmem>>, vector<1x2x128xbf16>,
      %66 = vector.extract_strided_slice %25 {offsets = [20, 0], sizes = [2, 128], strides = [1, 1]} : vector<80x128xbf16> to vector<2x128xbf16>
      %c0_38 = arith.constant 0 : index
      %c0_39 = arith.constant 0 : index
      %c1280 = arith.constant 1280 : index
      %67 = vector.load %arg9[%c0_38, %c0_39, %c1280] : memref<2x2x2432xbf16, #tpu.memory_space<vmem>>, vector<1x2x128xbf16>
      %68 = vector.shape_cast %67 : vector<1x2x128xbf16> to vector<2x128xbf16>
      %69 = vector.shape_cast %66 : vector<2x128xbf16> to vector<1x2x128xbf16>
      tpu.vector_store %arg9[%c0_38, %c0_39, %c1280], %69 {strides = array<i32>} : memref<2x2x2432xbf16, #tpu.memory_space<vmem>>, vector<1x2x128xbf16>,
      %70 = vector.extract_strided_slice %25 {offsets = [22, 0], sizes = [2, 128], strides = [1, 1]} : vector<80x128xbf16> to vector<2x128xbf16>
      %c0_40 = arith.constant 0 : index
      %c0_41 = arith.constant 0 : index
      %c1408 = arith.constant 1408 : index
      %71 = vector.load %arg9[%c0_40, %c0_41, %c1408] : memref<2x2x2432xbf16, #tpu.memory_space<vmem>>, vector<1x2x128xbf16>
      %72 = vector.shape_cast %71 : vector<1x2x128xbf16> to vector<2x128xbf16>
      %73 = vector.shape_cast %70 : vector<2x128xbf16> to vector<1x2x128xbf16>
      tpu.vector_store %arg9[%c0_40, %c0_41, %c1408], %73 {strides = array<i32>} : memref<2x2x2432xbf16, #tpu.memory_space<vmem>>, vector<1x2x128xbf16>,
      %74 = vector.extract_strided_slice %25 {offsets = [24, 0], sizes = [2, 128], strides = [1, 1]} : vector<80x128xbf16> to vector<2x128xbf16>
      %c0_42 = arith.constant 0 : index
      %c0_43 = arith.constant 0 : index
      %c1536 = arith.constant 1536 : index
      %75 = vector.load %arg9[%c0_42, %c0_43, %c1536] : memref<2x2x2432xbf16, #tpu.memory_space<vmem>>, vector<1x2x128xbf16>
      %76 = vector.shape_cast %75 : vector<1x2x128xbf16> to vector<2x128xbf16>
      %77 = vector.shape_cast %74 : vector<2x128xbf16> to vector<1x2x128xbf16>
      tpu.vector_store %arg9[%c0_42, %c0_43, %c1536], %77 {strides = array<i32>} : memref<2x2x2432xbf16, #tpu.memory_space<vmem>>, vector<1x2x128xbf16>,
      %78 = vector.extract_strided_slice %25 {offsets = [26, 0], sizes = [2, 128], strides = [1, 1]} : vector<80x128xbf16> to vector<2x128xbf16>
      %c0_44 = arith.constant 0 : index
      %c0_45 = arith.constant 0 : index
      %c1664 = arith.constant 1664 : index
      %79 = vector.load %arg9[%c0_44, %c0_45, %c1664] : memref<2x2x2432xbf16, #tpu.memory_space<vmem>>, vector<1x2x128xbf16>
      %80 = vector.shape_cast %79 : vector<1x2x128xbf16> to vector<2x128xbf16>
      %81 = vector.shape_cast %78 : vector<2x128xbf16> to vector<1x2x128xbf16>
      tpu.vector_store %arg9[%c0_44, %c0_45, %c1664], %81 {strides = array<i32>} : memref<2x2x2432xbf16, #tpu.memory_space<vmem>>, vector<1x2x128xbf16>,
      %82 = vector.extract_strided_slice %25 {offsets = [28, 0], sizes = [2, 128], strides = [1, 1]} : vector<80x128xbf16> to vector<2x128xbf16>
      %c0_46 = arith.constant 0 : index
      %c0_47 = arith.constant 0 : index
      %c1792 = arith.constant 1792 : index
      %83 = vector.load %arg9[%c0_46, %c0_47, %c1792] : memref<2x2x2432xbf16, #tpu.memory_space<vmem>>, vector<1x2x128xbf16>
      %84 = vector.shape_cast %83 : vector<1x2x128xbf16> to vector<2x128xbf16>
      %85 = vector.shape_cast %82 : vector<2x128xbf16> to vector<1x2x128xbf16>
      tpu.vector_store %arg9[%c0_46, %c0_47, %c1792], %85 {strides = array<i32>} : memref<2x2x2432xbf16, #tpu.memory_space<vmem>>, vector<1x2x128xbf16>,
      %86 = vector.extract_strided_slice %25 {offsets = [30, 0], sizes = [2, 128], strides = [1, 1]} : vector<80x128xbf16> to vector<2x128xbf16>
      %c0_48 = arith.constant 0 : index
      %c0_49 = arith.constant 0 : index
      %c1920 = arith.constant 1920 : index
      %87 = vector.load %arg9[%c0_48, %c0_49, %c1920] : memref<2x2x2432xbf16, #tpu.memory_space<vmem>>, vector<1x2x128xbf16>
      %88 = vector.shape_cast %87 : vector<1x2x128xbf16> to vector<2x128xbf16>
      %89 = vector.shape_cast %86 : vector<2x128xbf16> to vector<1x2x128xbf16>
      tpu.vector_store %arg9[%c0_48, %c0_49, %c1920], %89 {strides = array<i32>} : memref<2x2x2432xbf16, #tpu.memory_space<vmem>>, vector<1x2x128xbf16>,
      %90 = vector.extract_strided_slice %25 {offsets = [32, 0], sizes = [2, 128], strides = [1, 1]} : vector<80x128xbf16> to vector<2x128xbf16>
      %c0_50 = arith.constant 0 : index
      %c0_51 = arith.constant 0 : index
      %c2048 = arith.constant 2048 : index
      %91 = vector.load %arg9[%c0_50, %c0_51, %c2048] : memref<2x2x2432xbf16, #tpu.memory_space<vmem>>, vector<1x2x128xbf16>
      %92 = vector.shape_cast %91 : vector<1x2x128xbf16> to vector<2x128xbf16>
      %93 = vector.shape_cast %90 : vector<2x128xbf16> to vector<1x2x128xbf16>
      tpu.vector_store %arg9[%c0_50, %c0_51, %c2048], %93 {strides = array<i32>} : memref<2x2x2432xbf16, #tpu.memory_space<vmem>>, vector<1x2x128xbf16>,
      %94 = vector.extract_strided_slice %25 {offsets = [34, 0], sizes = [2, 128], strides = [1, 1]} : vector<80x128xbf16> to vector<2x128xbf16>
      %c0_52 = arith.constant 0 : index
      %c0_53 = arith.constant 0 : index
      %c2176 = arith.constant 2176 : index
      %95 = vector.load %arg9[%c0_52, %c0_53, %c2176] : memref<2x2x2432xbf16, #tpu.memory_space<vmem>>, vector<1x2x128xbf16>
      %96 = vector.shape_cast %95 : vector<1x2x128xbf16> to vector<2x128xbf16>
      %97 = vector.shape_cast %94 : vector<2x128xbf16> to vector<1x2x128xbf16>
      tpu.vector_store %arg9[%c0_52, %c0_53, %c2176], %97 {strides = array<i32>} : memref<2x2x2432xbf16, #tpu.memory_space<vmem>>, vector<1x2x128xbf16>,
      %98 = vector.extract_strided_slice %25 {offsets = [36, 0], sizes = [2, 128], strides = [1, 1]} : vector<80x128xbf16> to vector<2x128xbf16>
      %c0_54 = arith.constant 0 : index
      %c0_55 = arith.constant 0 : index
      %c2304 = arith.constant 2304 : index
      %99 = vector.load %arg9[%c0_54, %c0_55, %c2304] : memref<2x2x2432xbf16, #tpu.memory_space<vmem>>, vector<1x2x128xbf16>
      %100 = vector.shape_cast %99 : vector<1x2x128xbf16> to vector<2x128xbf16>
      %101 = vector.shape_cast %98 : vector<2x128xbf16> to vector<1x2x128xbf16>
      tpu.vector_store %arg9[%c0_54, %c0_55, %c2304], %101 {strides = array<i32>} : memref<2x2x2432xbf16, #tpu.memory_space<vmem>>, vector<1x2x128xbf16>,
      %102 = vector.extract_strided_slice %25 {offsets = [38, 0], sizes = [2, 128], strides = [1, 1]} : vector<80x128xbf16> to vector<2x128xbf16>
      %c1 = arith.constant 1 : index
      %c0_56 = arith.constant 0 : index
      %c0_57 = arith.constant 0 : index
      %103 = vector.load %arg9[%c1, %c0_56, %c0_57] : memref<2x2x2432xbf16, #tpu.memory_space<vmem>>, vector<1x2x128xbf16>
      %104 = vector.shape_cast %103 : vector<1x2x128xbf16> to vector<2x128xbf16>
      %105 = vector.shape_cast %102 : vector<2x128xbf16> to vector<1x2x128xbf16>
      tpu.vector_store %arg9[%c1, %c0_56, %c0_57], %105 {strides = array<i32>} : memref<2x2x2432xbf16, #tpu.memory_space<vmem>>, vector<1x2x128xbf16>,
      %106 = vector.extract_strided_slice %25 {offsets = [40, 0], sizes = [2, 128], strides = [1, 1]} : vector<80x128xbf16> to vector<2x128xbf16>
      %c1_58 = arith.constant 1 : index
      %c0_59 = arith.constant 0 : index
      %c128_60 = arith.constant 128 : index
      %107 = vector.load %arg9[%c1_58, %c0_59, %c128_60] : memref<2x2x2432xbf16, #tpu.memory_space<vmem>>, vector<1x2x128xbf16>
      %108 = vector.shape_cast %107 : vector<1x2x128xbf16> to vector<2x128xbf16>
      %109 = vector.shape_cast %106 : vector<2x128xbf16> to vector<1x2x128xbf16>
      tpu.vector_store %arg9[%c1_58, %c0_59, %c128_60], %109 {strides = array<i32>} : memref<2x2x2432xbf16, #tpu.memory_space<vmem>>, vector<1x2x128xbf16>,
      %110 = vector.extract_strided_slice %25 {offsets = [42, 0], sizes = [2, 128], strides = [1, 1]} : vector<80x128xbf16> to vector<2x128xbf16>
      %c1_61 = arith.constant 1 : index
      %c0_62 = arith.constant 0 : index
      %c256_63 = arith.constant 256 : index
      %111 = vector.load %arg9[%c1_61, %c0_62, %c256_63] : memref<2x2x2432xbf16, #tpu.memory_space<vmem>>, vector<1x2x128xbf16>
      %112 = vector.shape_cast %111 : vector<1x2x128xbf16> to vector<2x128xbf16>
      %113 = vector.shape_cast %110 : vector<2x128xbf16> to vector<1x2x128xbf16>
      tpu.vector_store %arg9[%c1_61, %c0_62, %c256_63], %113 {strides = array<i32>} : memref<2x2x2432xbf16, #tpu.memory_space<vmem>>, vector<1x2x128xbf16>,
      %114 = vector.extract_strided_slice %25 {offsets = [44, 0], sizes = [2, 128], strides = [1, 1]} : vector<80x128xbf16> to vector<2x128xbf16>
      %c1_64 = arith.constant 1 : index
      %c0_65 = arith.constant 0 : index
      %c384_66 = arith.constant 384 : index
      %115 = vector.load %arg9[%c1_64, %c0_65, %c384_66] : memref<2x2x2432xbf16, #tpu.memory_space<vmem>>, vector<1x2x128xbf16>
      %116 = vector.shape_cast %115 : vector<1x2x128xbf16> to vector<2x128xbf16>
      %117 = vector.shape_cast %114 : vector<2x128xbf16> to vector<1x2x128xbf16>
      tpu.vector_store %arg9[%c1_64, %c0_65, %c384_66], %117 {strides = array<i32>} : memref<2x2x2432xbf16, #tpu.memory_space<vmem>>, vector<1x2x128xbf16>,
      %118 = vector.extract_strided_slice %25 {offsets = [46, 0], sizes = [2, 128], strides = [1, 1]} : vector<80x128xbf16> to vector<2x128xbf16>
      %c1_67 = arith.constant 1 : index
      %c0_68 = arith.constant 0 : index
      %c512_69 = arith.constant 512 : index
      %119 = vector.load %arg9[%c1_67, %c0_68, %c512_69] : memref<2x2x2432xbf16, #tpu.memory_space<vmem>>, vector<1x2x128xbf16>
      %120 = vector.shape_cast %119 : vector<1x2x128xbf16> to vector<2x128xbf16>
      %121 = vector.shape_cast %118 : vector<2x128xbf16> to vector<1x2x128xbf16>
      tpu.vector_store %arg9[%c1_67, %c0_68, %c512_69], %121 {strides = array<i32>} : memref<2x2x2432xbf16, #tpu.memory_space<vmem>>, vector<1x2x128xbf16>,
      %122 = vector.extract_strided_slice %25 {offsets = [48, 0], sizes = [2, 128], strides = [1, 1]} : vector<80x128xbf16> to vector<2x128xbf16>
      %c1_70 = arith.constant 1 : index
      %c0_71 = arith.constant 0 : index
      %c640_72 = arith.constant 640 : index
      %123 = vector.load %arg9[%c1_70, %c0_71, %c640_72] : memref<2x2x2432xbf16, #tpu.memory_space<vmem>>, vector<1x2x128xbf16>
      %124 = vector.shape_cast %123 : vector<1x2x128xbf16> to vector<2x128xbf16>
      %125 = vector.shape_cast %122 : vector<2x128xbf16> to vector<1x2x128xbf16>
      tpu.vector_store %arg9[%c1_70, %c0_71, %c640_72], %125 {strides = array<i32>} : memref<2x2x2432xbf16, #tpu.memory_space<vmem>>, vector<1x2x128xbf16>,
      %126 = vector.extract_strided_slice %25 {offsets = [50, 0], sizes = [2, 128], strides = [1, 1]} : vector<80x128xbf16> to vector<2x128xbf16>
      %c1_73 = arith.constant 1 : index
      %c0_74 = arith.constant 0 : index
      %c768_75 = arith.constant 768 : index
      %127 = vector.load %arg9[%c1_73, %c0_74, %c768_75] : memref<2x2x2432xbf16, #tpu.memory_space<vmem>>, vector<1x2x128xbf16>
      %128 = vector.shape_cast %127 : vector<1x2x128xbf16> to vector<2x128xbf16>
      %129 = vector.shape_cast %126 : vector<2x128xbf16> to vector<1x2x128xbf16>
      tpu.vector_store %arg9[%c1_73, %c0_74, %c768_75], %129 {strides = array<i32>} : memref<2x2x2432xbf16, #tpu.memory_space<vmem>>, vector<1x2x128xbf16>,
      %130 = vector.extract_strided_slice %25 {offsets = [52, 0], sizes = [2, 128], strides = [1, 1]} : vector<80x128xbf16> to vector<2x128xbf16>
      %c1_76 = arith.constant 1 : index
      %c0_77 = arith.constant 0 : index
      %c896_78 = arith.constant 896 : index
      %131 = vector.load %arg9[%c1_76, %c0_77, %c896_78] : memref<2x2x2432xbf16, #tpu.memory_space<vmem>>, vector<1x2x128xbf16>
      %132 = vector.shape_cast %131 : vector<1x2x128xbf16> to vector<2x128xbf16>
      %133 = vector.shape_cast %130 : vector<2x128xbf16> to vector<1x2x128xbf16>
      tpu.vector_store %arg9[%c1_76, %c0_77, %c896_78], %133 {strides = array<i32>} : memref<2x2x2432xbf16, #tpu.memory_space<vmem>>, vector<1x2x128xbf16>,
      %134 = vector.extract_strided_slice %25 {offsets = [54, 0], sizes = [2, 128], strides = [1, 1]} : vector<80x128xbf16> to vector<2x128xbf16>
      %c1_79 = arith.constant 1 : index
      %c0_80 = arith.constant 0 : index
      %c1024_81 = arith.constant 1024 : index
      %135 = vector.load %arg9[%c1_79, %c0_80, %c1024_81] : memref<2x2x2432xbf16, #tpu.memory_space<vmem>>, vector<1x2x128xbf16>
      %136 = vector.shape_cast %135 : vector<1x2x128xbf16> to vector<2x128xbf16>
      %137 = vector.shape_cast %134 : vector<2x128xbf16> to vector<1x2x128xbf16>
      tpu.vector_store %arg9[%c1_79, %c0_80, %c1024_81], %137 {strides = array<i32>} : memref<2x2x2432xbf16, #tpu.memory_space<vmem>>, vector<1x2x128xbf16>,
      %138 = vector.extract_strided_slice %25 {offsets = [56, 0], sizes = [2, 128], strides = [1, 1]} : vector<80x128xbf16> to vector<2x128xbf16>
      %c1_82 = arith.constant 1 : index
      %c0_83 = arith.constant 0 : index
      %c1152_84 = arith.constant 1152 : index
      %139 = vector.load %arg9[%c1_82, %c0_83, %c1152_84] : memref<2x2x2432xbf16, #tpu.memory_space<vmem>>, vector<1x2x128xbf16>
      %140 = vector.shape_cast %139 : vector<1x2x128xbf16> to vector<2x128xbf16>
      %141 = vector.shape_cast %138 : vector<2x128xbf16> to vector<1x2x128xbf16>
      tpu.vector_store %arg9[%c1_82, %c0_83, %c1152_84], %141 {strides = array<i32>} : memref<2x2x2432xbf16, #tpu.memory_space<vmem>>, vector<1x2x128xbf16>,
      %142 = vector.extract_strided_slice %25 {offsets = [58, 0], sizes = [2, 128], strides = [1, 1]} : vector<80x128xbf16> to vector<2x128xbf16>
      %c1_85 = arith.constant 1 : index
      %c0_86 = arith.constant 0 : index
      %c1280_87 = arith.constant 1280 : index
      %143 = vector.load %arg9[%c1_85, %c0_86, %c1280_87] : memref<2x2x2432xbf16, #tpu.memory_space<vmem>>, vector<1x2x128xbf16>
      %144 = vector.shape_cast %143 : vector<1x2x128xbf16> to vector<2x128xbf16>
      %145 = vector.shape_cast %142 : vector<2x128xbf16> to vector<1x2x128xbf16>
      tpu.vector_store %arg9[%c1_85, %c0_86, %c1280_87], %145 {strides = array<i32>} : memref<2x2x2432xbf16, #tpu.memory_space<vmem>>, vector<1x2x128xbf16>,
      %146 = vector.extract_strided_slice %25 {offsets = [60, 0], sizes = [2, 128], strides = [1, 1]} : vector<80x128xbf16> to vector<2x128xbf16>
      %c1_88 = arith.constant 1 : index
      %c0_89 = arith.constant 0 : index
      %c1408_90 = arith.constant 1408 : index
      %147 = vector.load %arg9[%c1_88, %c0_89, %c1408_90] : memref<2x2x2432xbf16, #tpu.memory_space<vmem>>, vector<1x2x128xbf16>
      %148 = vector.shape_cast %147 : vector<1x2x128xbf16> to vector<2x128xbf16>
      %149 = vector.shape_cast %146 : vector<2x128xbf16> to vector<1x2x128xbf16>
      tpu.vector_store %arg9[%c1_88, %c0_89, %c1408_90], %149 {strides = array<i32>} : memref<2x2x2432xbf16, #tpu.memory_space<vmem>>, vector<1x2x128xbf16>,
      %150 = vector.extract_strided_slice %25 {offsets = [62, 0], sizes = [2, 128], strides = [1, 1]} : vector<80x128xbf16> to vector<2x128xbf16>
      %c1_91 = arith.constant 1 : index
      %c0_92 = arith.constant 0 : index
      %c1536_93 = arith.constant 1536 : index
      %151 = vector.load %arg9[%c1_91, %c0_92, %c1536_93] : memref<2x2x2432xbf16, #tpu.memory_space<vmem>>, vector<1x2x128xbf16>
      %152 = vector.shape_cast %151 : vector<1x2x128xbf16> to vector<2x128xbf16>
      %153 = vector.shape_cast %150 : vector<2x128xbf16> to vector<1x2x128xbf16>
      tpu.vector_store %arg9[%c1_91, %c0_92, %c1536_93], %153 {strides = array<i32>} : memref<2x2x2432xbf16, #tpu.memory_space<vmem>>, vector<1x2x128xbf16>,
      %154 = vector.extract_strided_slice %25 {offsets = [64, 0], sizes = [2, 128], strides = [1, 1]} : vector<80x128xbf16> to vector<2x128xbf16>
      %c1_94 = arith.constant 1 : index
      %c0_95 = arith.constant 0 : index
      %c1664_96 = arith.constant 1664 : index
      %155 = vector.load %arg9[%c1_94, %c0_95, %c1664_96] : memref<2x2x2432xbf16, #tpu.memory_space<vmem>>, vector<1x2x128xbf16>
      %156 = vector.shape_cast %155 : vector<1x2x128xbf16> to vector<2x128xbf16>
      %157 = vector.shape_cast %154 : vector<2x128xbf16> to vector<1x2x128xbf16>
      tpu.vector_store %arg9[%c1_94, %c0_95, %c1664_96], %157 {strides = array<i32>} : memref<2x2x2432xbf16, #tpu.memory_space<vmem>>, vector<1x2x128xbf16>,
      %158 = vector.extract_strided_slice %25 {offsets = [66, 0], sizes = [2, 128], strides = [1, 1]} : vector<80x128xbf16> to vector<2x128xbf16>
      %c1_97 = arith.constant 1 : index
      %c0_98 = arith.constant 0 : index
      %c1792_99 = arith.constant 1792 : index
      %159 = vector.load %arg9[%c1_97, %c0_98, %c1792_99] : memref<2x2x2432xbf16, #tpu.memory_space<vmem>>, vector<1x2x128xbf16>
      %160 = vector.shape_cast %159 : vector<1x2x128xbf16> to vector<2x128xbf16>
      %161 = vector.shape_cast %158 : vector<2x128xbf16> to vector<1x2x128xbf16>
      tpu.vector_store %arg9[%c1_97, %c0_98, %c1792_99], %161 {strides = array<i32>} : memref<2x2x2432xbf16, #tpu.memory_space<vmem>>, vector<1x2x128xbf16>,
      %162 = vector.extract_strided_slice %25 {offsets = [68, 0], sizes = [2, 128], strides = [1, 1]} : vector<80x128xbf16> to vector<2x128xbf16>
      %c1_100 = arith.constant 1 : index
      %c0_101 = arith.constant 0 : index
      %c1920_102 = arith.constant 1920 : index
      %163 = vector.load %arg9[%c1_100, %c0_101, %c1920_102] : memref<2x2x2432xbf16, #tpu.memory_space<vmem>>, vector<1x2x128xbf16>
      %164 = vector.shape_cast %163 : vector<1x2x128xbf16> to vector<2x128xbf16>
      %165 = vector.shape_cast %162 : vector<2x128xbf16> to vector<1x2x128xbf16>
      tpu.vector_store %arg9[%c1_100, %c0_101, %c1920_102], %165 {strides = array<i32>} : memref<2x2x2432xbf16, #tpu.memory_space<vmem>>, vector<1x2x128xbf16>,
      %166 = vector.extract_strided_slice %25 {offsets = [70, 0], sizes = [2, 128], strides = [1, 1]} : vector<80x128xbf16> to vector<2x128xbf16>
      %c1_103 = arith.constant 1 : index
      %c0_104 = arith.constant 0 : index
      %c2048_105 = arith.constant 2048 : index
      %167 = vector.load %arg9[%c1_103, %c0_104, %c2048_105] : memref<2x2x2432xbf16, #tpu.memory_space<vmem>>, vector<1x2x128xbf16>
      %168 = vector.shape_cast %167 : vector<1x2x128xbf16> to vector<2x128xbf16>
      %169 = vector.shape_cast %166 : vector<2x128xbf16> to vector<1x2x128xbf16>
      tpu.vector_store %arg9[%c1_103, %c0_104, %c2048_105], %169 {strides = array<i32>} : memref<2x2x2432xbf16, #tpu.memory_space<vmem>>, vector<1x2x128xbf16>,
      %170 = vector.extract_strided_slice %25 {offsets = [72, 0], sizes = [2, 128], strides = [1, 1]} : vector<80x128xbf16> to vector<2x128xbf16>
      %c1_106 = arith.constant 1 : index
      %c0_107 = arith.constant 0 : index
      %c2176_108 = arith.constant 2176 : index
      %171 = vector.load %arg9[%c1_106, %c0_107, %c2176_108] : memref<2x2x2432xbf16, #tpu.memory_space<vmem>>, vector<1x2x128xbf16>
      %172 = vector.shape_cast %171 : vector<1x2x128xbf16> to vector<2x128xbf16>
      %173 = vector.shape_cast %170 : vector<2x128xbf16> to vector<1x2x128xbf16>
      tpu.vector_store %arg9[%c1_106, %c0_107, %c2176_108], %173 {strides = array<i32>} : memref<2x2x2432xbf16, #tpu.memory_space<vmem>>, vector<1x2x128xbf16>,
      %174 = vector.extract_strided_slice %25 {offsets = [74, 0], sizes = [2, 128], strides = [1, 1]} : vector<80x128xbf16> to vector<2x128xbf16>
      %c1_109 = arith.constant 1 : index
      %c0_110 = arith.constant 0 : index
      %c2304_111 = arith.constant 2304 : index
      %175 = vector.load %arg9[%c1_109, %c0_110, %c2304_111] : memref<2x2x2432xbf16, #tpu.memory_space<vmem>>, vector<1x2x128xbf16>
      %176 = vector.shape_cast %175 : vector<1x2x128xbf16> to vector<2x128xbf16>
      %177 = vector.shape_cast %174 : vector<2x128xbf16> to vector<1x2x128xbf16>
      tpu.vector_store %arg9[%c1_109, %c0_110, %c2304_111], %177 {strides = array<i32>} : memref<2x2x2432xbf16, #tpu.memory_space<vmem>>, vector<1x2x128xbf16>,
      %c0_112 = arith.constant 0 : index
      %c0_113 = arith.constant 0 : index
      %178 = vector.load %arg5[%c0_112, %c0_113] : memref<1x128xf32, #tpu.memory_space<vmem>>, vector<1x128xf32>
      %179 = vector.shape_cast %178 : vector<1x128xf32> to vector<1x128xf32>
      %180 = vector.broadcast %179 : vector<1x128xf32> to vector<2x128xf32>
      %c0_114 = arith.constant 0 : index
      %c0_115 = arith.constant 0 : index
      %181 = vector.load %arg10[%c0_114, %c0_115] : memref<2x128xf32, #tpu.memory_space<vmem>>, vector<2x128xf32>
      tpu.vector_store %arg10[%c0_114, %c0_115], %180 {strides = array<i32>} : memref<2x128xf32, #tpu.memory_space<vmem>>, vector<2x128xf32>,
    } else {
    }
    %c0 = arith.constant 0 : index
    %c0_1 = arith.constant 0 : index
    %3 = vector.load %arg10[%c0, %c0_1] : memref<2x128xf32, #tpu.memory_space<vmem>>, vector<2x128xf32>
    %4 = arith.index_cast %arg0 : i32 to index
    %c0_2 = arith.constant 0 : index
    %c0_3 = arith.constant 0 : index
    %5 = vector.load %arg9[%4, %c0_2, %c0_3] : memref<2x2x2432xbf16, #tpu.memory_space<vmem>>, vector<1x2x2432xbf16>
    %6 = vector.shape_cast %5 : vector<1x2x2432xbf16> to vector<2x2432xbf16>
    %c0_4 = arith.constant 0 : index
    %c0_5 = arith.constant 0 : index
    %7 = vector.load %arg4[%c0_4, %c0_5] : memref<2432x128xbf16, #tpu.memory_space<vmem>>, vector<2432x128xbf16>
    %cst = arith.constant dense<0.000000e+00> : vector<2x128xf32>
    %8 = tpu.matmul %6, %7, %cst {dimension_numbers = #tpu.dot_dimension_numbers<[1], [0], [0], [1], [0, 0, 1, 1], [], []>} : vector<2x2432xbf16>, vector<2432x128xbf16>, vector<2x128xf32> -> vector<2x128xf32>
    %9 = arith.addf %3, %8 : vector<2x128xf32>
    %c0_6 = arith.constant 0 : index
    %c0_7 = arith.constant 0 : index
    %10 = vector.load %arg10[%c0_6, %c0_7] : memref<2x128xf32, #tpu.memory_space<vmem>>, vector<2x128xf32>
    tpu.vector_store %arg10[%c0_6, %c0_7], %9 {strides = array<i32>} : memref<2x128xf32, #tpu.memory_space<vmem>>, vector<2x128xf32>,
    %c1_i32 = arith.constant 1 : i32
    %11 = arith.cmpi eq, %arg0, %c1_i32 : i32
    %12 = arith.extui %11 : i1 to i32
    %c0_i32_8 = arith.constant 0 : i32
    %13 = arith.cmpi ne, %12, %c0_i32_8 : i32
    scf.if %13 {
      %c0_9 = arith.constant 0 : index
      %c0_10 = arith.constant 0 : index
      %14 = vector.load %arg10[%c0_9, %c0_10] : memref<2x128xf32, #tpu.memory_space<vmem>>, vector<2x128xf32>
      %cst_11 = arith.constant 0.000000e+00 : f32
      %15 = vector.broadcast %cst_11 : f32 to vector<2x128xf32>
      %16 = arith.maximumf %14, %15 : vector<2x128xf32>
      %c0_12 = arith.constant 0 : index
      %c0_13 = arith.constant 0 : index
      %17 = vector.load %arg6[%c0_12, %c0_13] : memref<128x10xf32, #tpu.memory_space<vmem>>, vector<128x10xf32>
      %cst_14 = arith.constant dense<0.000000e+00> : vector<2x10xf32>
      %18 = tpu.matmul %16, %17, %cst_14 {dimension_numbers = #tpu.dot_dimension_numbers<[1], [0], [0], [1], [0, 0, 1, 1], [], []>} : vector<2x128xf32>, vector<128x10xf32>, vector<2x10xf32> -> vector<2x10xf32>
      %c0_15 = arith.constant 0 : index
      %c0_16 = arith.constant 0 : index
      %19 = vector.load %arg7[%c0_15, %c0_16] : memref<1x10xf32, #tpu.memory_space<vmem>>, vector<1x10xf32>
      %20 = vector.broadcast %19 : vector<1x10xf32> to vector<2x10xf32>
      %21 = arith.addf %18, %20 : vector<2x10xf32>
      %c0_17 = arith.constant 0 : index
      %c0_18 = arith.constant 0 : index
      %22 = vector.load %arg8[%c0_17, %c0_18] : memref<2x10xf32, #tpu.memory_space<vmem>>, vector<2x10xf32>
      tpu.vector_store %arg8[%c0_17, %c0_18], %21 {strides = array<i32>} : memref<2x10xf32, #tpu.memory_space<vmem>>, vector<2x10xf32>,
    } else {
    }
    return
  }
  func.func @transform_0(%arg0: i32) -> (i32, i32) {
    %c0_i32 = arith.constant 0 : i32
    %c0_i32_0 = arith.constant 0 : i32
    %c0_i32_1 = arith.constant 0 : i32
    return %c0_i32, %c0_i32_0 : i32, i32
  }
  func.func @transform_1(%arg0: i32) -> (i32, i32) {
    %c0_i32 = arith.constant 0 : i32
    %c0_i32_0 = arith.constant 0 : i32
    %c0_i32_1 = arith.constant 0 : i32
    return %c0_i32, %c0_i32_0 : i32, i32
  }
  func.func @transform_2(%arg0: i32) -> (i32, i32) {
    %c0_i32 = arith.constant 0 : i32
    %c0_i32_0 = arith.constant 0 : i32
    %c0_i32_1 = arith.constant 0 : i32
    return %c0_i32, %c0_i32_0 : i32, i32
  }
  func.func @transform_3(%arg0: i32) -> (i32, i32) {
    %c0_i32 = arith.constant 0 : i32
    %c0_i32_0 = arith.constant 0 : i32
    return %arg0, %c0_i32 : i32, i32
  }
  func.func @transform_4(%arg0: i32) -> (i32, i32) {
    %c0_i32 = arith.constant 0 : i32
    %c0_i32_0 = arith.constant 0 : i32
    %c0_i32_1 = arith.constant 0 : i32
    return %c0_i32, %c0_i32_0 : i32, i32
  }
  func.func @transform_5(%arg0: i32) -> (i32, i32) {
    %c0_i32 = arith.constant 0 : i32
    %c0_i32_0 = arith.constant 0 : i32
    %c0_i32_1 = arith.constant 0 : i32
    return %c0_i32, %c0_i32_0 : i32, i32
  }
  func.func @transform_6(%arg0: i32) -> (i32, i32) {
    %c0_i32 = arith.constant 0 : i32
    %c0_i32_0 = arith.constant 0 : i32
    %c0_i32_1 = arith.constant 0 : i32
    return %c0_i32, %c0_i32_0 : i32, i32
  }
  func.func @transform_7(%arg0: i32) -> (i32, i32) {
    %c0_i32 = arith.constant 0 : i32
    %c0_i32_0 = arith.constant 0 : i32
    %c0_i32_1 = arith.constant 0 : i32
    return %c0_i32, %c0_i32_0 : i32, i32
  }
}

</mosaic_0001>

<bundles_post_ra>
// kernel: force1dcnn_forward.1
= control target key start
LH: loop header
LB: loop body
LE: loop exit
PB: predicated region body
PF: predicated region fallthrough
CT: control target
= control target key end

     0   :  { %12 = vsyncpa [#allocation5], 0  ;;  %s4027_s0 = inlined_call_operand.vmem [shape: f32[160,24], index: 0, kind: input, shape index: {}]   ;;  %s4028_s1 = inlined_call_operand.hbm [shape: f32[24,128], index: 1, kind: input, shape index: {}]   ;;  %s4029_s2 = inlined_call_operand.hbm [shape: f32[1,128], index: 2, kind: input, shape index: {}]   ;;  %s4030_s3 = inlined_call_operand.hbm [shape: bf16[4864,128], index: 3, kind: input, shape index: {}]   ;;  %s4031_s4 = inlined_call_operand.hbm [shape: f32[1,128], index: 4, kind: input, shape index: {}]   ;;  %s4032_s5 = inlined_call_operand.vmem [shape: f32[128,10], index: 5, kind: input, shape index: {}]   ;;  %s4033_s6 = inlined_call_operand.hbm [shape: f32[1,10], index: 6, kind: input, shape index: {}]   ;;  %s4034_s7 = inlined_call_operand.hbm [shape: f32[2,10], index: 7, kind: output, shape index: {}]  }
   0x1   :  { %13 = vsyncpa [#allocation8], 0 }
   0x2   :  { %14 = vsyncpa [#allocation12], 0 }
   0x3   :  { %15 = vsyncpa [#allocation6], 0  ;;  %s3571_s24 = smov 0   ;;  %s3573_s25 = smov 0  }
   0x4   :  { %s3575_s26 = smov 0   ;;  %s3577_s27 = smov 0  }
   0x5 LB: > { %s3590_s28 = sadd.s32 4294967295, %s3520_s27   ;;  %p104_p0 = scmp.ne.s32.totalorder %s3512_s25, %s3508_s24  ;;  %s3520_s27 = sphi %s3577_s27, %s4042_s27   ;;  %s3516_s26 = sphi %s3575_s26, %s4041_s26   ;;  %s3512_s25 = sphi %s3573_s25, %s4040_s25   ;;  %s3508_s24 = sphi %s3571_s24, %s4039_s24  }
   0x6   : > { %p105_p1 = scmp.eq.s32.totalorder %s3590_s28, 0  ;;  %p2384_p2 = scmp.ge.s32.totalorder %s3520_s27, 1 }
   0x7   : > { %p199_p3 = scmp.lt.s32.totalorder %s3520_s27, 3  ;;  %p2385_p4 = scmp.ne.s32.totalorder %s3590_s28, 0 }
   0x8   : > { %p3599_p5 = por %p105_p1, %p104_p0  ;;  %s213_s9 = sshll.u32 %s4028_s1, 4  ;;  %s214_s9 = int_to_ptr.hbm [resolvable:$true] %s213_s9 }
   0x9   : > { %p3606_p6 = pnand %p2384_p2, %p199_p3  ;;  %s3522_s11 = smov [#allocation4]  }
   0xa   : > { %s215_s12 = sshll.u32 %s3522_s11, 4  ;;  %s228_s16 = sshll.u32 %s4029_s2, 4  ;;  %s216_s12 = int_to_ptr.vmem [resolvable:$true] %s215_s12  ;;  %s229_s16 = int_to_ptr.hbm [resolvable:$true] %s228_s16 }
   0xb   : > { %p3216_p7 = pneg %p3606_p6  ;;  %s3523_s17 = smov 128  }
   0xc   : > { %s3524_s18 = smov 8   ;;  %s3525_s19 = smov [#allocation7]  }
   0xd   : > { %p3614_p8 = pnand %p3216_p7, %p105_p1  ;;  %s230_s20 = sshll.u32 %s3525_s19, 4  ;;  %s231_s20 = int_to_ptr.vmem [resolvable:$true] %s230_s20 }
   0xe   : > { %s240_s23 = sshll.u32 %s4031_s4, 4  ;;  %s255_s8 = sshll.u32 %s4033_s6, 4  ;;  %s241_s23 = int_to_ptr.hbm [resolvable:$true] %s240_s23  ;;  %s256_s8 = int_to_ptr.hbm [resolvable:$true] %s255_s8 }
   0xf   : > { %3219 = dma.hbm_to_vmem [thread:$0]  (!%p3614_p8), %s214_s9, 384, %s216_s12, [#allocation5], %s3523_s17, %s3523_s17, %s3524_s18  }
  0x10   : > { %3222 = dma.hbm_to_vmem [thread:$0]  (!%p3614_p8), %s229_s16, 16, %s231_s20, [#allocation8]  }
  0x11   : > { %s3526_s9 = smov [#allocation10]   ;;  %s3527_s12 = smov [#allocation11]  }
  0x12   : > { %s242_s11 = sshll.u32 %s3526_s9, 4  ;;  %s257_s14 = sshll.u32 %s3527_s12, 4  ;;  %s243_s11 = int_to_ptr.vmem [resolvable:$true] %s242_s11  ;;  %s258_s14 = int_to_ptr.vmem [resolvable:$true] %s257_s14 }
  0x13   : > { %3225 = dma.hbm_to_vmem [thread:$0]  (!%p3614_p8), %s241_s23, 16, %s243_s11, [#allocation8]  }
  0x14   : > { %3228 = dma.hbm_to_vmem [thread:$0]  (!%p3614_p8), %s256_s8, 16, %s258_s14, [#allocation12]  }
  0x15   : > { %s3636_s15 = sadd.s32 1, %s3520_s27   ;;  %s91_s16 = sadd.s32 1, %s3516_s26 }
  0x16   : > { %s88_s17 = ssub.s32 %s3520_s27, %s3636_s15  ;;  %p98_p9 = scmp.ne.s32.totalorder %s3516_s26, %s3512_s25 }
  0x17   : > { %p89_p10 = scmp.eq.s32.totalorder %s88_s17, 0  ;;  %p99_p11 = scmp.eq.s32.totalorder %s3520_s27, 0 }
  0x18   : > { %p3237_p12 = scmp.lt.s32.totalorder %s3520_s27, 2  ;;  %s268_s18 = sand.u32 1, %s3520_s27  }
  0x19   : > { %s3647_s19 = scalar_select %p89_p10, %s3516_s26, %s91_s16  }
  0x1a   : > { %p100_p13 = por %p99_p11, %p98_p9  ;;  %s270_s20 = sand.u32 1, %s3516_s26  }
  0x1b   : > { %s3030_s21 = smul.u32 1216, %s3520_s27  ;;  %s269_s12 = scalar_lea.sflag [#allocation5], %s268_s18 }
  0x1c   : > { %s3192_s22 = smul.u32 1216, %s270_s20  ;;  %p3651_p0 = pnand %p3237_p12, %p100_p13 }
  0x1d   : > { %s277_s30 = scalar_lea.hbm %s4030_s3, %s3030_s21  ;;  %s3415_s20 = scalar_lea.hbm %s4030_s3, 2432 }
  0x1e   : > { %s278_s8 = sshll.u32 %s277_s30, 4  ;;  %s272_s9 = scalar_lea.vmem [#allocation9], %s3192_s22  ;;  %s279_s8 = int_to_ptr.hbm [resolvable:$true] %s278_s8 }
  0x1f   : > { %s280_s11 = sshll.u32 %s272_s9, 4  ;;  %s3408_s14 = sshra.s32 %s279_s8, 4  ;;  %s281_s11 = int_to_ptr.vmem [resolvable:$true] %s280_s11  ;;  %s3409_s14 = int_to_ptr.hbm [resolvable:$true] %s3408_s14 }
  0x20   : > { %s3410_s16 = scalar_lea.hbm %s3409_s14, 1216  ;;  %p3412_p3 = pneg %p3651_p0 }
  0x21   : > { %p3411_p2 = scmp.ne.s32.totalorder %s3409_s14, %s3410_s16  ;;  %p3416_p9 = scmp.lt.s32.totalorder %s3409_s14, %s4030_s3 }
  0x22   : > { %p3417_p10 = scmp.lt.s32.totalorder %s3415_s20, %s3410_s16 }
  0x23   : > { %p3413_p7 = pnand %p3412_p3, %p3411_p2 }
  0x24   : > { %p3418_p11 = por %p3417_p10, %p3416_p9 }
  0x25   : > { %p3414_p8 = pneg %p3413_p7 }
  0x27   : > { %p3419_p12 = pnand %p3418_p11, %p3414_p8 }
  0x29   : > { %3422 = shalt.err (!%p3419_p12)
}
  0x2a   : > { %s3528_s18 = smov 64   ;;  %s3529_s22 = smov 4  }
  0x2b   : > { %3232 = dma.hbm_to_vmem [thread:$0]  (!%p3651_p0), %s279_s8, 19456, %s281_s11, %s269_s12, %s3528_s18, %s3528_s18, %s3529_s22  }
  0x2c   : > { %292 = sbr.rel (%p3606_p6) target bundleno = 933 (0x3a5), region = 48 }
  0x31   : > { %3483 = dma.done.wait (%p105_p1), [#allocation5], 384  }
  0x32   : > { %3485 = vsyncadd (%p105_p1), [#allocation5], 4294966912 }
  0x33   : > { %3487 = dma.done.wait (%p105_p1), [#allocation8], 16  }
  0x34   : > { %3489 = vsyncadd (%p105_p1), [#allocation8], 4294967280  ;;  %s304_s23 = sand.u32 1, %s3590_s28   ;;  %s306_s24 = sand.u32 1, %s3512_s25  }
  0x35   : > { %s3193_s30 = smul.u32 1216, %s306_s24  ;;  %s305_s10 = scalar_lea.sflag [#allocation5], %s304_s23 }
  0x37   : > { %s3680_s8 = scalar_lea.vmem [#allocation9], %s3193_s30 }
  0x38   : > { %3491 = dma.done.wait (%p3599_p5), %s305_s10, 19456  }
  0x39   : > { %3493 = vsyncadd (%p3599_p5), %s305_s10, 4294947840 }
  0x3a   : > { %3495 = dma.done.wait (%p105_p1), [#allocation8], 16  }
  0x3b   : > { %3497 = vsyncadd (%p105_p1), [#allocation8], 4294967280 }
  0x3c   : > { %3499 = dma.done.wait (%p105_p1), [#allocation12], 16  }
  0x3d   : > { %3501 = vsyncadd (%p105_p1), [#allocation12], 4294967280  ;;  %349 = sbr.rel (%p2385_p4) target bundleno = 465 (0x1d1), region = 72 }
  0x42   : > { %v372_v0 = vld [vmem:[#allocation4 + $0x10] sm:$0xff]  ;;  %v371_v1 = vld [vmem:[#allocation4 + $0x8] sm:$0xff]  ;;  %v370_v2 = vld [vmem:[#allocation4] sm:$0xff]  ;;  %vm373_vm0 = vcmask 195584  }
  0x43   : > { %3184 = vmatpush.msra.mxu2 %v372_v0  ;;  %447 = vmatpush.msra.mxu0 %v372_v0  ;;  %v360_v3 = vld [vmem:[%s4027_s0 + $0x50] sm:$0xff]  ;;  %v350_v4 = vld [vmem:[%s4027_s0] sm:$0xff]  ;;  %v365_v5 = vld [vmem:[%s4027_s0 + $0x78] sm:$0xff] }
  0x44   : > { %3185 = vmatpush.msra.mxu3 %v372_v0  ;;  %3183 = vmatpush.msra.mxu1 %v372_v0  ;;  %v355_v6 = vld [vmem:[%s4027_s0 + $0x28] sm:$0xff]  ;;  %v361_v7 = vld [vmem:[%s4027_s0 + $0x58] sm:$0xff]  ;;  %v362_v9 = vld [vmem:[%s4027_s0 + $0x60] sm:$0xff] }
  0x45   : > { %3187 = vmatpush.msra.mxu2 %v371_v1  ;;  %448 = vmatpush.msra.mxu0 %v371_v1  ;;  %v351_v8 = vld [vmem:[%s4027_s0 + $0x8] sm:$0xff]  ;;  %v352_v10 = vld [vmem:[%s4027_s0 + $0x10] sm:$0xff]  ;;  %v353_v12 = vld [vmem:[%s4027_s0 + $0x18] sm:$0xff] }
  0x46   : > { %3188 = vmatpush.msra.mxu3 %v371_v1  ;;  %3186 = vmatpush.msra.mxu1 %v371_v1  ;;  %v363_v11 = vld [vmem:[%s4027_s0 + $0x68] sm:$0xff]  ;;  %v364_v13 = vld [vmem:[%s4027_s0 + $0x70] sm:$0xff]  ;;  %v354_v14 = vld [vmem:[%s4027_s0 + $0x20] sm:$0xff] }
  0x47   : > { %3190 = vmatpush.msra.mxu2 %v370_v2  ;;  %449 = vmatpush.msra.mxu0 %v370_v2  ;;  %v366_v15 = vld [vmem:[%s4027_s0 + $0x80] sm:$0xff]  ;;  %v356_v16 = vld [vmem:[%s4027_s0 + $0x30] sm:$0xff]  ;;  %v3752_v18 = vld [vmem:[#allocation7] ss:$0 sm:$0xff] }
  0x48   : > { %2407 = vmatmul.msk.f32.vlgmr.msra.gmra.mxu2 %vm373_vm0, %v360_v3  ;;  %2397 = vmatmul.msk.f32.vlgmr.msra.gmra.mxu0 %vm373_vm0, %v350_v4  ;;  %v367_v27 = vld [vmem:[%s4027_s0 + $0x88] sm:$0xff]  ;;  %v357_v31 = vld [vmem:[%s4027_s0 + $0x38] sm:$0xff]  ;;  %v368_v41 = vld [vmem:[%s4027_s0 + $0x90] sm:$0xff] }
  0x49   : > { %3191 = vmatpush.msra.mxu3 %v370_v2  ;;  %3189 = vmatpush.msra.mxu1 %v370_v2  ;;  %v358_v42 = vld [vmem:[%s4027_s0 + $0x40] sm:$0xff]  ;;  %v369_v52 = vld [vmem:[%s4027_s0 + $0x98] sm:$0xff]  ;;  %v359_v53 = vld [vmem:[%s4027_s0 + $0x48] sm:$0xff] }
  0x4a   : > { %2412 = vmatmul.msk.f32.vlgmr.msra.gmra.mxu3 %vm373_vm0, %v365_v5  ;;  %2402 = vmatmul.msk.f32.vlgmr.msra.gmra.mxu1 %vm373_vm0, %v355_v6 }
  0x50   : > { %2408 = vmatmul.msk.f32.gmra.mxu2 %vm373_vm0, %v361_v7  ;;  %2398 = vmatmul.msk.f32.gmra.mxu0 %vm373_vm0, %v351_v8 }
  0x52   : > { %2413 = vmatmul.msk.f32.gmra.mxu3 %vm373_vm0, %v366_v15  ;;  %2403 = vmatmul.msk.f32.gmra.mxu1 %vm373_vm0, %v356_v16 }
  0x58   : > { %2409 = vmatmul.msk.f32.gmra.mxu2 %vm373_vm0, %v362_v9  ;;  %2399 = vmatmul.msk.f32.gmra.mxu0 %vm373_vm0, %v352_v10 }
  0x5a   : > { %2414 = vmatmul.msk.f32.gmra.mxu3 %vm373_vm0, %v367_v27  ;;  %2404 = vmatmul.msk.f32.gmra.mxu1 %vm373_vm0, %v357_v31 }
  0x60   : > { %2410 = vmatmul.msk.f32.gmra.mxu2 %vm373_vm0, %v363_v11  ;;  %2400 = vmatmul.msk.f32.gmra.mxu0 %vm373_vm0, %v353_v12 }
  0x62   : > { %2415 = vmatmul.msk.f32.gmra.mxu3 %vm373_vm0, %v368_v41  ;;  %2405 = vmatmul.msk.f32.gmra.mxu1 %vm373_vm0, %v358_v42 }
  0x68   : > { %2411 = vmatmul.msk.f32.gmra.mxu2 %vm373_vm0, %v364_v13  ;;  %2401 = vmatmul.msk.f32.gmra.mxu0 %vm373_vm0, %v354_v14 }
  0x6a   : > { %2416 = vmatmul.msk.f32.gmra.mxu3 %vm373_vm0, %v369_v52  ;;  %2406 = vmatmul.msk.f32.gmra.mxu1 %vm373_vm0, %v359_v53 }
  0xc5   : > { %v451_v17 = vpop.f32.mrf.mxu0 }
  0xc7   : > { %v466_v0 = vpop.f32.mrf.mxu1 }
  0xcb   : > { %v481_v19 = vpop.f32.mrf.mxu2 }
  0xcc   : > { %v511_v20 = vmax.f32 %v451_v17, %v481_v19 }
  0xcd   : > { %v454_v23 = vpop.f32.mrf.mxu0  ;;  %v496_v1 = vpop.f32.mrf.mxu3 }
  0xce   : > { %v525_v21 = vadd.f32 %v3752_v18, %v511_v20  ;;  %v516_v2 = vmax.f32 %v466_v0, %v496_v1 }
  0xcf   : > { %v469_v9 = vpop.f32.mrf.mxu1 }
  0xd0   : > { %v535_v22 = vmax.f32 %v525_v21, 0.0  ;;  %v530_v3 = vadd.f32 %v3752_v18, %v516_v2 }
  0xd2   : > { %v545_v24 = vpack.c.bf16 %v535_v22, %v535_v22  ;;  %v540_v5 = vmax.f32 %v530_v3, 0.0 }
  0xd3   : > { %v484_v25 = vpop.f32.mrf.mxu2 }
  0xd4   : > { %555 = vst [vmem:[#allocation2] sm:$0x1] %v545_v24  ;;  %v512_v26 = vmax.f32 %v454_v23, %v484_v25  ;;  %v550_v6 = vpack.c.bf16 %v540_v5, %v540_v5 }
  0xd5   : > { %557 = vst [vmem:[#allocation1] sm:$0xff] %v545_v24  ;;  %v457_v33 = vpop.f32.mrf.mxu0  ;;  %v499_v10 = vpop.f32.mrf.mxu3 }
  0xd6   : > { %v526_v28 = vadd.f32 %v3752_v18, %v512_v26  ;;  %641 = vst [vmem:[#allocation2 + $0x14] sm:$0x1] %v550_v6  ;;  %v517_v11 = vmax.f32 %v469_v9, %v499_v10 }
  0xd7   : > { %v472_v19 = vpop.f32.mrf.mxu1 }
  0xd8   : > { %v536_v29 = vmax.f32 %v526_v28, 0.0  ;;  %v531_v12 = vadd.f32 %v3752_v18, %v517_v11 }
  0xda   : > { %v546_v30 = vpack.c.bf16 %v536_v29, %v536_v29  ;;  %v541_v14 = vmax.f32 %v531_v12, 0.0 }
  0xdb   : > { %v487_v34 = vpop.f32.mrf.mxu2 }
  0xdc   : > { %v559_v32 = vld [vmem:[#allocation1 + $0x1] ss:$4 sm:$0xff]  ;;  %572 = vst [vmem:[#allocation2 + $0x4] sm:$0x1] %v546_v30  ;;  %v513_v35 = vmax.f32 %v457_v33, %v487_v34  ;;  %v551_v15 = vpack.c.bf16 %v541_v14, %v541_v14 }
  0xdd   : > { %561 = vst [vmem:[#allocation2 + $0x1] sm:$0x1] %v559_v32  ;;  %v460_v44 = vpop.f32.mrf.mxu0  ;;  %v502_v20 = vpop.f32.mrf.mxu3 }
  0xde   : > { %562 = vst [vmem:[#allocation1] sm:$0xff] %v545_v24  ;;  %v527_v36 = vadd.f32 %v3752_v18, %v513_v35  ;;  %v518_v21 = vmax.f32 %v472_v19, %v502_v20 }
  0xdf   : > { %658 = vst [vmem:[#allocation2 + $0x18] sm:$0x1] %v551_v15  ;;  %v475_v28 = vpop.f32.mrf.mxu1 }
  0xe0   : > { %v537_v38 = vmax.f32 %v527_v36, 0.0  ;;  %v532_v22 = vadd.f32 %v3752_v18, %v518_v21 }
  0xe2   : > { %v547_v39 = vpack.c.bf16 %v537_v38, %v537_v38 }
  0xe3   : > { %v490_v45 = vpop.f32.mrf.mxu2 }
  0xe4   : > { %589 = vst [vmem:[#allocation2 + $0x8] sm:$0x1] %v547_v39  ;;  %v514_v46 = vmax.f32 %v460_v44, %v490_v45  ;;  %v3286_v45 = vld [vmem:[#allocation10] ss:$0 sm:$0xff] }
  0xe5   : > { %v564_v37 = vld [vmem:[#allocation1 + $0x2] ss:$4 sm:$0xff]  ;;  %v463_v55 = vpop.f32.mrf.mxu0  ;;  %v505_v29 = vpop.f32.mrf.mxu3  ;;  %720 = vst [vmem:[#allocation3] sm:$0x3] %v3286_v45 }
  0xe6   : > { %566 = vst [vmem:[#allocation2 + $0x2] sm:$0x1] %v564_v37  ;;  %v528_v47 = vadd.f32 %v3752_v18, %v514_v46 }
  0xe7   : > { %567 = vst [vmem:[#allocation1] sm:$0xff] %v545_v24  ;;  %v542_v24 = vmax.f32 %v532_v22, 0.0  ;;  %v478_v37 = vpop.f32.mrf.mxu1 }
  0xe8   : > { %v538_v49 = vmax.f32 %v528_v47, 0.0 }
  0xe9   : > { %v552_v25 = vpack.c.bf16 %v542_v24, %v542_v24 }
  0xea   : > { %v548_v50 = vpack.c.bf16 %v538_v49, %v538_v49 }
  0xeb   : > { %v493_v56 = vpop.f32.mrf.mxu2  ;;  %675 = vst [vmem:[#allocation2 + $0x1c] sm:$0x1] %v552_v25 }
  0xec   : > { %606 = vst [vmem:[#allocation2 + $0xc] sm:$0x1] %v548_v50  ;;  %v515_v57 = vmax.f32 %v463_v55, %v493_v56 }
  0xed   : > { %v508_v38 = vpop.f32.mrf.mxu3 }
  0xee   : > { %v569_v40 = vld [vmem:[#allocation1 + $0x3] ss:$4 sm:$0xff]  ;;  %v529_v58 = vadd.f32 %v3752_v18, %v515_v57 }
  0xef   : > { %571 = vst [vmem:[#allocation2 + $0x3] sm:$0x1] %v569_v40 }
  0xf0   : > { %574 = vst [vmem:[#allocation1] sm:$0xff] %v546_v30  ;;  %v539_v60 = vmax.f32 %v529_v58, 0.0 }
  0xf2   : > { %v549_v61 = vpack.c.bf16 %v539_v60, %v539_v60 }
  0xf4   : > { %623 = vst [vmem:[#allocation2 + $0x10] sm:$0x1] %v549_v61 }
  0xf7   : > { %v576_v43 = vld [vmem:[#allocation1 + $0x1] ss:$4 sm:$0xff] }
  0xf8   : > { %578 = vst [vmem:[#allocation2 + $0x5] sm:$0x1] %v576_v43 }
  0xf9   : > { %579 = vst [vmem:[#allocation1] sm:$0xff] %v546_v30 }
 0x100   : > { %v581_v48 = vld [vmem:[#allocation1 + $0x2] ss:$4 sm:$0xff] }
 0x101   : > { %583 = vst [vmem:[#allocation2 + $0x6] sm:$0x1] %v581_v48 }
 0x102   : > { %584 = vst [vmem:[#allocation1] sm:$0xff] %v546_v30  ;;  %v519_v30 = vmax.f32 %v475_v28, %v505_v29 }
 0x104   : > { %v533_v31 = vadd.f32 %v3752_v18, %v519_v30 }
 0x106   : > { %v543_v33 = vmax.f32 %v533_v31, 0.0 }
 0x108   : > { %v553_v34 = vpack.c.bf16 %v543_v33, %v543_v33 }
 0x109   : > { %v586_v51 = vld [vmem:[#allocation1 + $0x3] ss:$4 sm:$0xff] }
 0x10a   : > { %588 = vst [vmem:[#allocation2 + $0x7] sm:$0x1] %v586_v51 }
 0x10b   : > { %591 = vst [vmem:[#allocation1] sm:$0xff] %v547_v39 }
 0x10c   : > { %692 = vst [vmem:[#allocation2 + $0x20] sm:$0x1] %v553_v34 }
 0x112   : > { %v593_v54 = vld [vmem:[#allocation1 + $0x1] ss:$4 sm:$0xff] }
 0x113   : > { %595 = vst [vmem:[#allocation2 + $0x9] sm:$0x1] %v593_v54 }
 0x114   : > { %596 = vst [vmem:[#allocation1] sm:$0xff] %v547_v39 }
 0x11b   : > { %v598_v59 = vld [vmem:[#allocation1 + $0x2] ss:$4 sm:$0xff] }
 0x11c   : > { %600 = vst [vmem:[#allocation2 + $0xa] sm:$0x1] %v598_v59 }
 0x11d   : > { %601 = vst [vmem:[#allocation1] sm:$0xff] %v547_v39  ;;  %v520_v39 = vmax.f32 %v478_v37, %v508_v38 }
 0x11f   : > { %v534_v40 = vadd.f32 %v3752_v18, %v520_v39 }
 0x121   : > { %v544_v42 = vmax.f32 %v534_v40, 0.0 }
 0x123   : > { %v554_v43 = vpack.c.bf16 %v544_v42, %v544_v42 }
 0x124   : > { %v603_v62 = vld [vmem:[#allocation1 + $0x3] ss:$4 sm:$0xff] }
 0x125   : > { %605 = vst [vmem:[#allocation2 + $0xb] sm:$0x1] %v603_v62 }
 0x126   : > { %608 = vst [vmem:[#allocation1] sm:$0xff] %v548_v50 }
 0x127   : > { %709 = vst [vmem:[#allocation2 + $0x24] sm:$0x1] %v554_v43 }
 0x12d   : > { %v610_v63 = vld [vmem:[#allocation1 + $0x1] ss:$4 sm:$0xff] }
 0x12e   : > { %612 = vst [vmem:[#allocation2 + $0xd] sm:$0x1] %v610_v63 }
 0x12f   : > { %613 = vst [vmem:[#allocation1] sm:$0xff] %v548_v50 }
 0x136   : > { %v615_v4 = vld [vmem:[#allocation1 + $0x2] ss:$4 sm:$0xff] }
 0x137   : > { %617 = vst [vmem:[#allocation2 + $0xe] sm:$0x1] %v615_v4 }
 0x138   : > { %618 = vst [vmem:[#allocation1] sm:$0xff] %v548_v50 }
 0x13f   : > { %v620_v7 = vld [vmem:[#allocation1 + $0x3] ss:$4 sm:$0xff] }
 0x140   : > { %622 = vst [vmem:[#allocation2 + $0xf] sm:$0x1] %v620_v7 }
 0x141   : > { %625 = vst [vmem:[#allocation1] sm:$0xff] %v549_v61 }
 0x148   : > { %v627_v8 = vld [vmem:[#allocation1 + $0x1] ss:$4 sm:$0xff] }
 0x149   : > { %629 = vst [vmem:[#allocation2 + $0x11] sm:$0x1] %v627_v8 }
 0x14a   : > { %630 = vst [vmem:[#allocation1] sm:$0xff] %v549_v61 }
 0x151   : > { %v632_v13 = vld [vmem:[#allocation1 + $0x2] ss:$4 sm:$0xff] }
 0x152   : > { %634 = vst [vmem:[#allocation2 + $0x12] sm:$0x1] %v632_v13 }
 0x153   : > { %635 = vst [vmem:[#allocation1] sm:$0xff] %v549_v61 }
 0x15a   : > { %v637_v16 = vld [vmem:[#allocation1 + $0x3] ss:$4 sm:$0xff] }
 0x15b   : > { %640 = vst [vmem:[#allocation2 + $0x13] sm:$0x1] %v637_v16 }
 0x15c   : > { %643 = vst [vmem:[#allocation1] sm:$0xff] %v550_v6 }
 0x163   : > { %v645_v17 = vld [vmem:[#allocation1 + $0x1] ss:$4 sm:$0xff] }
 0x164   : > { %647 = vst [vmem:[#allocation2 + $0x15] sm:$0x1] %v645_v17 }
 0x165   : > { %648 = vst [vmem:[#allocation1] sm:$0xff] %v550_v6 }
 0x16c   : > { %v650_v23 = vld [vmem:[#allocation1 + $0x2] ss:$4 sm:$0xff] }
 0x16d   : > { %652 = vst [vmem:[#allocation2 + $0x16] sm:$0x1] %v650_v23 }
 0x16e   : > { %653 = vst [vmem:[#allocation1] sm:$0xff] %v550_v6 }
 0x175   : > { %v655_v26 = vld [vmem:[#allocation1 + $0x3] ss:$4 sm:$0xff] }
 0x176   : > { %657 = vst [vmem:[#allocation2 + $0x17] sm:$0x1] %v655_v26 }
 0x177   : > { %660 = vst [vmem:[#allocation1] sm:$0xff] %v551_v15 }
 0x17e   : > { %v662_v27 = vld [vmem:[#allocation1 + $0x1] ss:$4 sm:$0xff] }
 0x17f   : > { %664 = vst [vmem:[#allocation2 + $0x19] sm:$0x1] %v662_v27 }
 0x180   : > { %665 = vst [vmem:[#allocation1] sm:$0xff] %v551_v15 }
 0x187   : > { %v667_v32 = vld [vmem:[#allocation1 + $0x2] ss:$4 sm:$0xff] }
 0x188   : > { %669 = vst [vmem:[#allocation2 + $0x1a] sm:$0x1] %v667_v32 }
 0x189   : > { %670 = vst [vmem:[#allocation1] sm:$0xff] %v551_v15 }
 0x190   : > { %v672_v35 = vld [vmem:[#allocation1 + $0x3] ss:$4 sm:$0xff] }
 0x191   : > { %674 = vst [vmem:[#allocation2 + $0x1b] sm:$0x1] %v672_v35 }
 0x192   : > { %677 = vst [vmem:[#allocation1] sm:$0xff] %v552_v25 }
 0x199   : > { %v679_v36 = vld [vmem:[#allocation1 + $0x1] ss:$4 sm:$0xff] }
 0x19a   : > { %681 = vst [vmem:[#allocation2 + $0x1d] sm:$0x1] %v679_v36 }
 0x19b   : > { %682 = vst [vmem:[#allocation1] sm:$0xff] %v552_v25 }
 0x1a2   : > { %v684_v41 = vld [vmem:[#allocation1 + $0x2] ss:$4 sm:$0xff] }
 0x1a3   : > { %686 = vst [vmem:[#allocation2 + $0x1e] sm:$0x1] %v684_v41 }
 0x1a4   : > { %687 = vst [vmem:[#allocation1] sm:$0xff] %v552_v25 }
 0x1ab   : > { %v689_v44 = vld [vmem:[#allocation1 + $0x3] ss:$4 sm:$0xff] }
 0x1ac   : > { %691 = vst [vmem:[#allocation2 + $0x1f] sm:$0x1] %v689_v44 }
 0x1ad   : > { %694 = vst [vmem:[#allocation1] sm:$0xff] %v553_v34 }
 0x1b4   : > { %v696_v46 = vld [vmem:[#allocation1 + $0x1] ss:$4 sm:$0xff] }
 0x1b5   : > { %698 = vst [vmem:[#allocation2 + $0x21] sm:$0x1] %v696_v46 }
 0x1b6   : > { %699 = vst [vmem:[#allocation1] sm:$0xff] %v553_v34 }
 0x1bd   : > { %v701_v47 = vld [vmem:[#allocation1 + $0x2] ss:$4 sm:$0xff] }
 0x1be   : > { %703 = vst [vmem:[#allocation2 + $0x22] sm:$0x1] %v701_v47 }
 0x1bf   : > { %704 = vst [vmem:[#allocation1] sm:$0xff] %v553_v34 }
 0x1c6   : > { %v706_v48 = vld [vmem:[#allocation1 + $0x3] ss:$4 sm:$0xff] }
 0x1c7   : > { %708 = vst [vmem:[#allocation2 + $0x23] sm:$0x1] %v706_v48 }
 0x1c8   : > { %711 = vst [vmem:[#allocation1] sm:$0xff] %v554_v43 }
 0x1cf   : > { %v713_v18 = vld [vmem:[#allocation1 + $0x1] ss:$4 sm:$0xff] }
 0x1d0   : > { %715 = vst [vmem:[#allocation2 + $0x25] sm:$0x1] %v713_v18 }
 0x1d1 PF: > { %v3038_v49 = vld [vmem:[%s3680_s8 + $0x38] sm:$0xff]  ;;  %v3037_v53 = vld [vmem:[%s3680_s8 + $0x30] sm:$0xff]  ;;  %v3036_v57 = vld [vmem:[%s3680_s8 + $0x28] sm:$0xff]  ;;  %s722_s27 = smul.u32 19, %s3590_s28  ;;  %p3025_p1 = scmp.ne.s32.totalorder %s3590_s28, 1 }
 0x1d2   : > { %v3046_v50 = vld [vmem:[%s3680_s8 + $0x78] sm:$0xff]  ;;  %1987 = vmatpush.bf16.msra.mxu0 %v3038_v49  ;;  %v3045_v54 = vld [vmem:[%s3680_s8 + $0x70] sm:$0xff]  ;;  %v3044_v58 = vld [vmem:[%s3680_s8 + $0x68] sm:$0xff] }
 0x1d3   : > { %v3054_v51 = vld [vmem:[%s3680_s8 + $0xb8] sm:$0xff]  ;;  %2000 = vmatpush.bf16.msra.mxu1 %v3046_v50  ;;  %v3053_v55 = vld [vmem:[%s3680_s8 + $0xb0] sm:$0xff]  ;;  %v3052_v59 = vld [vmem:[%s3680_s8 + $0xa8] sm:$0xff]  ;;  %s3809_s17 = scalar_lea.vmem [#allocation2], %s722_s27 }
 0x1d4   : > { %v3062_v52 = vld [vmem:[%s3680_s8 + $0xf8] sm:$0xff]  ;;  %2013 = vmatpush.bf16.msra.mxu2 %v3054_v51  ;;  %v3061_v56 = vld [vmem:[%s3680_s8 + $0xf0] sm:$0xff]  ;;  %v3060_v60 = vld [vmem:[%s3680_s8 + $0xe8] sm:$0xff] }
 0x1d5   : > { %2026 = vmatpush.bf16.msra.mxu3 %v3062_v52  ;;  %v3035_v61 = vld [vmem:[%s3680_s8 + $0x20] sm:$0xff]  ;;  %v3034_v1 = vld [vmem:[%s3680_s8 + $0x18] sm:$0xff]  ;;  %v3033_v6 = vld [vmem:[%s3680_s8 + $0x10] sm:$0xff] }
 0x1d6   : > { %1988 = vmatpush.bf16.msra.mxu0 %v3037_v53  ;;  %v3043_v62 = vld [vmem:[%s3680_s8 + $0x60] sm:$0xff]  ;;  %v3042_v2 = vld [vmem:[%s3680_s8 + $0x58] sm:$0xff]  ;;  %v3041_v7 = vld [vmem:[%s3680_s8 + $0x50] sm:$0xff] }
 0x1d7   : > { %2001 = vmatpush.bf16.msra.mxu1 %v3045_v54  ;;  %v3051_v63 = vld [vmem:[%s3680_s8 + $0xa0] sm:$0xff]  ;;  %v3050_v3 = vld [vmem:[%s3680_s8 + $0x98] sm:$0xff]  ;;  %v3049_v8 = vld [vmem:[%s3680_s8 + $0x90] sm:$0xff] }
 0x1d8   : > { %2014 = vmatpush.bf16.msra.mxu2 %v3053_v55  ;;  %v3059_v0 = vld [vmem:[%s3680_s8 + $0xe0] sm:$0xff]  ;;  %v3058_v4 = vld [vmem:[%s3680_s8 + $0xd8] sm:$0xff]  ;;  %v3057_v9 = vld [vmem:[%s3680_s8 + $0xd0] sm:$0xff] }
 0x1d9   : > { %2027 = vmatpush.bf16.msra.mxu3 %v3061_v56  ;;  %v724_v5 = vld [vmem:[%s3809_s17] sm:$0xff]  ;;  %v3032_v10 = vld [vmem:[%s3680_s8 + $0x8] sm:$0xff]  ;;  %v3031_v14 = vld [vmem:[%s3680_s8] sm:$0xff] }
 0x1da   : > { %1989 = vmatpush.bf16.msra.mxu0 %v3036_v57  ;;  %1032 = vst [vmem:[#allocation1] ss:$9 sm:$0xff] %v724_v5  ;;  %v3040_v11 = vld [vmem:[%s3680_s8 + $0x48] sm:$0xff]  ;;  %v3039_v15 = vld [vmem:[%s3680_s8 + $0x40] sm:$0xff]  ;;  %v3070_v17 = vld [vmem:[%s3680_s8 + $0x138] sm:$0xff] }
 0x1db   : > { %2002 = vmatpush.bf16.msra.mxu1 %v3044_v58  ;;  %v3048_v12 = vld [vmem:[%s3680_s8 + $0x88] sm:$0xff]  ;;  %v3047_v16 = vld [vmem:[%s3680_s8 + $0x80] sm:$0xff]  ;;  %v3078_v19 = vld [vmem:[%s3680_s8 + $0x178] sm:$0xff] }
 0x1dc   : > { %2015 = vmatpush.bf16.msra.mxu2 %v3052_v59  ;;  %v3056_v13 = vld [vmem:[%s3680_s8 + $0xc8] sm:$0xff]  ;;  %v3086_v20 = vld [vmem:[%s3680_s8 + $0x1b8] sm:$0xff]  ;;  %v3055_v21 = vld [vmem:[%s3680_s8 + $0xc0] sm:$0xff] }
 0x1dd   : > { %2028 = vmatpush.bf16.msra.mxu3 %v3060_v60  ;;  %v3094_v22 = vld [vmem:[%s3680_s8 + $0x1f8] sm:$0xff]  ;;  %v3069_v24 = vld [vmem:[%s3680_s8 + $0x130] sm:$0xff]  ;;  %v3068_v31 = vld [vmem:[%s3680_s8 + $0x128] sm:$0xff] }
 0x1de   : > { %1990 = vmatpush.bf16.msra.mxu0 %v3035_v61  ;;  %v3077_v26 = vld [vmem:[%s3680_s8 + $0x170] sm:$0xff]  ;;  %v3076_v32 = vld [vmem:[%s3680_s8 + $0x168] sm:$0xff]  ;;  %v725_v34 = vld [vmem:[%s3809_s17 + $0x8] sm:$0xff] }
 0x1df   : > { %2003 = vmatpush.bf16.msra.mxu1 %v3043_v62  ;;  %v3085_v27 = vld [vmem:[%s3680_s8 + $0x1b0] sm:$0xff]  ;;  %v3084_v33 = vld [vmem:[%s3680_s8 + $0x1a8] sm:$0xff]  ;;  %v3067_v36 = vld [vmem:[%s3680_s8 + $0x120] sm:$0xff] }
 0x1e0   : > { %2016 = vmatpush.bf16.msra.mxu2 %v3051_v63  ;;  %v3093_v29 = vld [vmem:[%s3680_s8 + $0x1f0] sm:$0xff]  ;;  %v3092_v35 = vld [vmem:[%s3680_s8 + $0x1e8] sm:$0xff]  ;;  %v3075_v41 = vld [vmem:[%s3680_s8 + $0x160] sm:$0xff] }
 0x1e1   : > { %2029 = vmatpush.bf16.msra.mxu3 %v3059_v0  ;;  %v1033_v23 = vld [vmem:[#allocation1] sm:$0xff]  ;;  %v1035_v25 = vld [vmem:[#allocation1 + $0x12] sm:$0xff]  ;;  %v1034_v28 = vld [vmem:[#allocation1 + $0x9] sm:$0xff] }
 0x1e2   : > { %1991 = vmatpush.bf16.msra.mxu0 %v3034_v1  ;;  %v1036_v30 = vld [vmem:[#allocation1 + $0x1b] sm:$0xff]  ;;  %v1037_v38 = vld [vmem:[#allocation1 + $0x24] sm:$0xff]  ;;  %v1038_v40 = vld [vmem:[#allocation1 + $0x2d] sm:$0xff] }
 0x1e3   : > { %2004 = vmatpush.bf16.msra.mxu1 %v3042_v2  ;;  %v1039_v37 = vld [vmem:[#allocation1 + $0x36] sm:$0xff]  ;;  %v3838_v39 = vld [vmem:[#allocation1 + $0x3f] sm:$0xff]  ;;  %v3083_v42 = vld [vmem:[%s3680_s8 + $0x1a0] sm:$0xff] }
 0x1e4   : > { %2017 = vmatpush.bf16.msra.mxu2 %v3050_v3  ;;  %1042 = vst [vmem:[#allocation1] ss:$9 sm:$0xff] %v725_v34  ;;  %v3091_v43 = vld [vmem:[%s3680_s8 + $0x1e0] sm:$0xff]  ;;  %v3066_v44 = vld [vmem:[%s3680_s8 + $0x118] sm:$0xff]  ;;  %v3065_v48 = vld [vmem:[%s3680_s8 + $0x110] sm:$0xff] }
 0x1e5   : > { %2030 = vmatpush.bf16.msra.mxu3 %v3058_v4  ;;  %v3074_v45 = vld [vmem:[%s3680_s8 + $0x158] sm:$0xff]  ;;  %v3073_v18 = vld [vmem:[%s3680_s8 + $0x150] sm:$0xff]  ;;  %v3064_v51 = vld [vmem:[%s3680_s8 + $0x108] sm:$0xff] }
 0x1e6   : > { %1992 = vmatpush.bf16.msra.mxu0 %v3033_v6  ;;  %v3082_v46 = vld [vmem:[%s3680_s8 + $0x198] sm:$0xff]  ;;  %v3081_v49 = vld [vmem:[%s3680_s8 + $0x190] sm:$0xff]  ;;  %v3072_v52 = vld [vmem:[%s3680_s8 + $0x148] sm:$0xff] }
 0x1e7   : > { %2005 = vmatpush.bf16.msra.mxu1 %v3041_v7  ;;  %v3090_v47 = vld [vmem:[%s3680_s8 + $0x1d8] sm:$0xff]  ;;  %v3089_v50 = vld [vmem:[%s3680_s8 + $0x1d0] sm:$0xff]  ;;  %v3080_v53 = vld [vmem:[%s3680_s8 + $0x188] sm:$0xff] }
 0x1e8   : > { %2018 = vmatpush.bf16.msra.mxu2 %v3049_v8  ;;  %v3088_v54 = vld [vmem:[%s3680_s8 + $0x1c8] sm:$0xff]  ;;  %v3063_v55 = vld [vmem:[%s3680_s8 + $0x100] sm:$0xff]  ;;  %v3102_v58 = vld [vmem:[%s3680_s8 + $0x238] sm:$0xff] }
 0x1e9   : > { %2031 = vmatpush.bf16.msra.mxu3 %v3057_v9  ;;  %v3071_v56 = vld [vmem:[%s3680_s8 + $0x140] sm:$0xff]  ;;  %v3110_v59 = vld [vmem:[%s3680_s8 + $0x278] sm:$0xff]  ;;  %v3101_v63 = vld [vmem:[%s3680_s8 + $0x230] sm:$0xff] }
 0x1ea   : > { %1993 = vmatpush.bf16.msra.mxu0 %v3032_v10  ;;  %v3079_v57 = vld [vmem:[%s3680_s8 + $0x180] sm:$0xff]  ;;  %v3118_v60 = vld [vmem:[%s3680_s8 + $0x2b8] sm:$0xff]  ;;  %v3109_v0 = vld [vmem:[%s3680_s8 + $0x270] sm:$0xff] }
 0x1eb   : > { %2006 = vmatpush.bf16.msra.mxu1 %v3040_v11  ;;  %v3087_v61 = vld [vmem:[%s3680_s8 + $0x1c0] sm:$0xff]  ;;  %v3126_v62 = vld [vmem:[%s3680_s8 + $0x2f8] sm:$0xff]  ;;  %v3117_v1 = vld [vmem:[%s3680_s8 + $0x2b0] sm:$0xff] }
 0x1ec   : > { %2019 = vmatpush.bf16.msra.mxu2 %v3048_v12  ;;  %v3125_v2 = vld [vmem:[%s3680_s8 + $0x2f0] sm:$0xff]  ;;  %v3100_v3 = vld [vmem:[%s3680_s8 + $0x228] sm:$0xff]  ;;  %v3099_v7 = vld [vmem:[%s3680_s8 + $0x220] sm:$0xff] }
 0x1ed   : > { %2032 = vmatpush.bf16.msra.mxu3 %v3056_v13  ;;  %v3108_v4 = vld [vmem:[%s3680_s8 + $0x268] sm:$0xff]  ;;  %v3107_v8 = vld [vmem:[%s3680_s8 + $0x260] sm:$0xff]  ;;  %v3098_v11 = vld [vmem:[%s3680_s8 + $0x218] sm:$0xff] }
 0x1ee   : > { %1994 = vmatpush.bf16.msra.mxu0 %v3031_v14  ;;  %v3116_v5 = vld [vmem:[%s3680_s8 + $0x2a8] sm:$0xff]  ;;  %v3115_v9 = vld [vmem:[%s3680_s8 + $0x2a0] sm:$0xff]  ;;  %v3106_v12 = vld [vmem:[%s3680_s8 + $0x258] sm:$0xff] }
 0x1ef   : > { %2007 = vmatpush.bf16.msra.mxu1 %v3039_v15  ;;  %v3124_v6 = vld [vmem:[%s3680_s8 + $0x2e8] sm:$0xff]  ;;  %v3123_v10 = vld [vmem:[%s3680_s8 + $0x2e0] sm:$0xff]  ;;  %v3114_v13 = vld [vmem:[%s3680_s8 + $0x298] sm:$0xff] }
 0x1f0   : > { %2020 = vmatpush.bf16.msra.mxu2 %v3047_v16  ;;  %v3122_v14 = vld [vmem:[%s3680_s8 + $0x2d8] sm:$0xff]  ;;  %v3097_v15 = vld [vmem:[%s3680_s8 + $0x210] sm:$0xff]  ;;  %v1045_v34 = vld [vmem:[#allocation1 + $0x12] sm:$0xff] }
 0x1f1   : > { %2033 = vmatpush.bf16.msra.mxu3 %v3055_v21  ;;  %1995 = vmatmul.bf16.vlgmr.msra.gmra.mxu0 %v1033_v23  ;;  %v3105_v16 = vld [vmem:[%s3680_s8 + $0x250] sm:$0xff]  ;;  %v3104_v21 = vld [vmem:[%s3680_s8 + $0x248] sm:$0xff] }
 0x1f2   : > { %2039 = vmatpush.bf16.msrb.mxu0 %v3070_v17  ;;  %2008 = vmatmul.bf16.vlgmr.msra.gmra.mxu1 %v1034_v28  ;;  %v3113_v17 = vld [vmem:[%s3680_s8 + $0x290] sm:$0xff]  ;;  %v3120_v23 = vld [vmem:[%s3680_s8 + $0x2c8] sm:$0xff] }
 0x1f3   : > { %2052 = vmatpush.bf16.msrb.mxu1 %v3078_v19  ;;  %2021 = vmatmul.bf16.vlgmr.msra.gmra.mxu2 %v1035_v25  ;;  %v3121_v19 = vld [vmem:[%s3680_s8 + $0x2d0] sm:$0xff]  ;;  %v3103_v25 = vld [vmem:[%s3680_s8 + $0x240] sm:$0xff] }
 0x1f4   : > { %2065 = vmatpush.bf16.msrb.mxu2 %v3086_v20  ;;  %2034 = vmatmul.bf16.vlgmr.msra.gmra.mxu3 %v1036_v30  ;;  %v3096_v20 = vld [vmem:[%s3680_s8 + $0x208] sm:$0xff]  ;;  %v3150_v30 = vld [vmem:[%s3680_s8 + $0x3b8] sm:$0xff] }
 0x1f5   : > { %2078 = vmatpush.bf16.msrb.mxu3 %v3094_v22  ;;  %v3112_v22 = vld [vmem:[%s3680_s8 + $0x288] sm:$0xff] }
 0x1f6   : > { %2040 = vmatpush.bf16.msrb.mxu0 %v3069_v24  ;;  %v3095_v24 = vld [vmem:[%s3680_s8 + $0x200] sm:$0xff] }
 0x1f7   : > { %2053 = vmatpush.bf16.msrb.mxu1 %v3077_v26  ;;  %v3111_v26 = vld [vmem:[%s3680_s8 + $0x280] sm:$0xff] }
 0x1f8   : > { %2066 = vmatpush.bf16.msrb.mxu2 %v3085_v27  ;;  %v3134_v27 = vld [vmem:[%s3680_s8 + $0x338] sm:$0xff]  ;;  %v726_v28 = vld [vmem:[%s3809_s17 + $0x10] sm:$0x7] }
 0x1f9   : > { %2079 = vmatpush.bf16.msrb.mxu3 %v3093_v29  ;;  %v3142_v29 = vld [vmem:[%s3680_s8 + $0x378] sm:$0xff] }
 0x1fa   : > { %2041 = vmatpush.bf16.msrb.mxu0 %v3068_v31  ;;  %v3119_v31 = vld [vmem:[%s3680_s8 + $0x2c0] sm:$0xff] }
 0x1fb   : > { %2054 = vmatpush.bf16.msrb.mxu1 %v3076_v32  ;;  %v1043_v32 = vld [vmem:[#allocation1] sm:$0xff] }
 0x1fc   : > { %2067 = vmatpush.bf16.msrb.mxu2 %v3084_v33  ;;  %v3158_v33 = vld [vmem:[%s3680_s8 + $0x3f8] sm:$0xff] }
 0x1fd   : > { %2080 = vmatpush.bf16.msrb.mxu3 %v3092_v35  ;;  %v1044_v35 = vld [vmem:[#allocation1 + $0x9] sm:$0xff] }
 0x1fe   : > { %2042 = vmatpush.bf16.msrb.mxu0 %v3067_v36  ;;  %v3133_v36 = vld [vmem:[%s3680_s8 + $0x330] sm:$0xff] }
 0x1ff   : > { %2055 = vmatpush.bf16.msrb.mxu1 %v3075_v41  ;;  %v3903_v41 = vld [vmem:[#allocation1 + $0x2d] sm:$0xff] }
 0x200   : > { %2068 = vmatpush.bf16.msrb.mxu2 %v3083_v42  ;;  %v3905_v42 = vld [vmem:[#allocation1 + $0x3f] sm:$0xff] }
 0x201   : > { %2081 = vmatpush.bf16.msrb.mxu3 %v3091_v43  ;;  %v3149_v43 = vld [vmem:[%s3680_s8 + $0x3b0] sm:$0xff] }
 0x202   : > { %2043 = vmatpush.bf16.msrb.mxu0 %v3066_v44  ;;  %v3157_v44 = vld [vmem:[%s3680_s8 + $0x3f0] sm:$0xff] }
 0x203   : > { %2056 = vmatpush.bf16.msrb.mxu1 %v3074_v45  ;;  %v3132_v45 = vld [vmem:[%s3680_s8 + $0x328] sm:$0xff] }
 0x204   : > { %2069 = vmatpush.bf16.msrb.mxu2 %v3082_v46  ;;  %v3140_v46 = vld [vmem:[%s3680_s8 + $0x368] sm:$0xff] }
 0x205   : > { %2082 = vmatpush.bf16.msrb.mxu3 %v3090_v47  ;;  %v3148_v47 = vld [vmem:[%s3680_s8 + $0x3a8] sm:$0xff] }
 0x206   : > { %2044 = vmatpush.bf16.msrb.mxu0 %v3065_v48  ;;  %v3156_v48 = vld [vmem:[%s3680_s8 + $0x3e8] sm:$0xff] }
 0x207   : > { %2057 = vmatpush.bf16.msrb.mxu1 %v3073_v18  ;;  %v3131_v18 = vld [vmem:[%s3680_s8 + $0x320] sm:$0xff] }
 0x208   : > { %2070 = vmatpush.bf16.msrb.mxu2 %v3081_v49  ;;  %v3139_v49 = vld [vmem:[%s3680_s8 + $0x360] sm:$0xff] }
 0x209   : > { %2083 = vmatpush.bf16.msrb.mxu3 %v3089_v50  ;;  %v3147_v50 = vld [vmem:[%s3680_s8 + $0x3a0] sm:$0xff] }
 0x20a   : > { %2045 = vmatpush.bf16.msrb.mxu0 %v3064_v51  ;;  %v3155_v51 = vld [vmem:[%s3680_s8 + $0x3e0] sm:$0xff] }
 0x20b   : > { %2058 = vmatpush.bf16.msrb.mxu1 %v3072_v52  ;;  %v3130_v52 = vld [vmem:[%s3680_s8 + $0x318] sm:$0xff] }
 0x20c   : > { %2071 = vmatpush.bf16.msrb.mxu2 %v3080_v53  ;;  %v3138_v53 = vld [vmem:[%s3680_s8 + $0x358] sm:$0xff] }
 0x20d   : > { %2084 = vmatpush.bf16.msrb.mxu3 %v3088_v54  ;;  %v3146_v54 = vld [vmem:[%s3680_s8 + $0x398] sm:$0xff] }
 0x20e   : > { %2046 = vmatpush.bf16.msrb.mxu0 %v3063_v55  ;;  %v3154_v55 = vld [vmem:[%s3680_s8 + $0x3d8] sm:$0xff] }
 0x20f   : > { %2059 = vmatpush.bf16.msrb.mxu1 %v3071_v56  ;;  %v3129_v56 = vld [vmem:[%s3680_s8 + $0x310] sm:$0xff] }
 0x210   : > { %2072 = vmatpush.bf16.msrb.mxu2 %v3079_v57  ;;  %v3137_v57 = vld [vmem:[%s3680_s8 + $0x350] sm:$0xff] }
 0x211   : > { %2085 = vmatpush.bf16.msrb.mxu3 %v3087_v61  ;;  %2047 = vmatmul.bf16.vlgmr.msrb.gmra.mxu0 %v1037_v38  ;;  %v3141_v38 = vld [vmem:[%s3680_s8 + $0x370] sm:$0xff]  ;;  %v3136_v61 = vld [vmem:[%s3680_s8 + $0x348] sm:$0xff] }
 0x212   : > { %2091 = vmatpush.bf16.msra.mxu0 %v3102_v58  ;;  %2060 = vmatmul.bf16.vlgmr.msrb.gmra.mxu1 %v1038_v40  ;;  %v3901_v40 = vld [vmem:[#allocation1 + $0x36] sm:$0xff] }
 0x213   : > { %2104 = vmatpush.bf16.msra.mxu1 %v3110_v59  ;;  %2073 = vmatmul.bf16.vlgmr.msrb.gmra.mxu2 %v1039_v37  ;;  %v1046_v37 = vld [vmem:[#allocation1 + $0x1b] sm:$0xff] }
 0x214   : > { %2117 = vmatpush.bf16.msra.mxu2 %v3118_v60  ;;  %2086 = vmatmul.bf16.vlgmr.msrb.gmra.mxu3 %v3838_v39  ;;  %v3899_v39 = vld [vmem:[#allocation1 + $0x24] sm:$0xff]  ;;  %v3145_v58 = vld [vmem:[%s3680_s8 + $0x390] sm:$0xff]  ;;  %v3128_v60 = vld [vmem:[%s3680_s8 + $0x308] sm:$0xff] }
 0x215   : > { %2130 = vmatpush.bf16.msra.mxu3 %v3126_v62  ;;  %1052 = vst [vmem:[#allocation1] ss:$9 sm:$0xff] %v726_v28  ;;  %v3153_v59 = vld [vmem:[%s3680_s8 + $0x3d0] sm:$0xff]  ;;  %v3144_v62 = vld [vmem:[%s3680_s8 + $0x388] sm:$0xff]  ;;  %v3175_v28 = vld [vmem:[%s3680_s8 + $0x480] sm:$0xff] }
 0x216   : > { %2092 = vmatpush.bf16.msra.mxu0 %v3101_v63  ;;  %v3152_v63 = vld [vmem:[%s3680_s8 + $0x3c8] sm:$0xff] }
 0x217   : > { %2105 = vmatpush.bf16.msra.mxu1 %v3109_v0  ;;  %v3127_v0 = vld [vmem:[%s3680_s8 + $0x300] sm:$0xff] }
 0x218   : > { %2118 = vmatpush.bf16.msra.mxu2 %v3117_v1  ;;  %v3135_v1 = vld [vmem:[%s3680_s8 + $0x340] sm:$0xff] }
 0x219   : > { %2131 = vmatpush.bf16.msra.mxu3 %v3125_v2  ;;  %v3166_v2 = vld [vmem:[%s3680_s8 + $0x438] sm:$0xff] }
 0x21a   : > { %2093 = vmatpush.bf16.msra.mxu0 %v3100_v3  ;;  %v3143_v3 = vld [vmem:[%s3680_s8 + $0x380] sm:$0xff] }
 0x21b   : > { %2106 = vmatpush.bf16.msra.mxu1 %v3108_v4  ;;  %v3174_v4 = vld [vmem:[%s3680_s8 + $0x478] sm:$0xff] }
 0x21c   : > { %2119 = vmatpush.bf16.msra.mxu2 %v3116_v5  ;;  %v3182_v5 = vld [vmem:[%s3680_s8 + $0x4b8] sm:$0xff] }
 0x21d   : > { %2132 = vmatpush.bf16.msra.mxu3 %v3124_v6  ;;  %v3151_v6 = vld [vmem:[%s3680_s8 + $0x3c0] sm:$0xff] }
 0x21e   : > { %2094 = vmatpush.bf16.msra.mxu0 %v3099_v7  ;;  %v3165_v7 = vld [vmem:[%s3680_s8 + $0x430] sm:$0xff] }
 0x21f   : > { %2107 = vmatpush.bf16.msra.mxu1 %v3107_v8  ;;  %v3173_v8 = vld [vmem:[%s3680_s8 + $0x470] sm:$0xff] }
 0x220   : > { %2120 = vmatpush.bf16.msra.mxu2 %v3115_v9  ;;  %v3181_v9 = vld [vmem:[%s3680_s8 + $0x4b0] sm:$0xff] }
 0x221   : > { %2133 = vmatpush.bf16.msra.mxu3 %v3123_v10  ;;  %v3164_v10 = vld [vmem:[%s3680_s8 + $0x428] sm:$0xff] }
 0x222   : > { %2095 = vmatpush.bf16.msra.mxu0 %v3098_v11  ;;  %v3172_v11 = vld [vmem:[%s3680_s8 + $0x468] sm:$0xff] }
 0x223   : > { %2108 = vmatpush.bf16.msra.mxu1 %v3106_v12  ;;  %v3180_v12 = vld [vmem:[%s3680_s8 + $0x4a8] sm:$0xff] }
 0x224   : > { %2121 = vmatpush.bf16.msra.mxu2 %v3114_v13  ;;  %v3163_v13 = vld [vmem:[%s3680_s8 + $0x420] sm:$0xff] }
 0x225   : > { %2134 = vmatpush.bf16.msra.mxu3 %v3122_v14  ;;  %v3171_v14 = vld [vmem:[%s3680_s8 + $0x460] sm:$0xff] }
 0x226   : > { %2096 = vmatpush.bf16.msra.mxu0 %v3097_v15  ;;  %v3179_v15 = vld [vmem:[%s3680_s8 + $0x4a0] sm:$0xff] }
 0x227   : > { %2109 = vmatpush.bf16.msra.mxu1 %v3105_v16  ;;  %v3162_v16 = vld [vmem:[%s3680_s8 + $0x418] sm:$0xff] }
 0x228   : > { %2122 = vmatpush.bf16.msra.mxu2 %v3113_v17  ;;  %v3170_v17 = vld [vmem:[%s3680_s8 + $0x458] sm:$0xff] }
 0x229   : > { %2135 = vmatpush.bf16.msra.mxu3 %v3121_v19  ;;  %v3178_v19 = vld [vmem:[%s3680_s8 + $0x498] sm:$0xff] }
 0x22a   : > { %2097 = vmatpush.bf16.msra.mxu0 %v3096_v20  ;;  %v3161_v20 = vld [vmem:[%s3680_s8 + $0x410] sm:$0xff] }
 0x22b   : > { %2110 = vmatpush.bf16.msra.mxu1 %v3104_v21  ;;  %v3169_v21 = vld [vmem:[%s3680_s8 + $0x450] sm:$0xff] }
 0x22c   : > { %2123 = vmatpush.bf16.msra.mxu2 %v3112_v22  ;;  %v3177_v22 = vld [vmem:[%s3680_s8 + $0x490] sm:$0xff] }
 0x22d   : > { %2136 = vmatpush.bf16.msra.mxu3 %v3120_v23  ;;  %v3160_v23 = vld [vmem:[%s3680_s8 + $0x408] sm:$0xff] }
 0x22e   : > { %2098 = vmatpush.bf16.msra.mxu0 %v3095_v24  ;;  %v3168_v24 = vld [vmem:[%s3680_s8 + $0x448] sm:$0xff] }
 0x22f   : > { %2111 = vmatpush.bf16.msra.mxu1 %v3103_v25  ;;  %v3176_v25 = vld [vmem:[%s3680_s8 + $0x488] sm:$0xff] }
 0x230   : > { %2124 = vmatpush.bf16.msra.mxu2 %v3111_v26  ;;  %v3159_v26 = vld [vmem:[%s3680_s8 + $0x400] sm:$0xff] }
 0x231   : > { %2137 = vmatpush.bf16.msra.mxu3 %v3119_v31  ;;  %2099 = vmatmul.bf16.vlgmr.msra.gmra.mxu0 %v1043_v32  ;;  %v1055_v31 = vld [vmem:[#allocation1 + $0x12] sm:$0xff] }
 0x232   : > { %2143 = vmatpush.bf16.msrb.mxu0 %v3134_v27  ;;  %2112 = vmatmul.bf16.vlgmr.msra.gmra.mxu1 %v1044_v35  ;;  %v3167_v27 = vld [vmem:[%s3680_s8 + $0x440] sm:$0xff] }
 0x233   : > { %2156 = vmatpush.bf16.msrb.mxu1 %v3142_v29  ;;  %2125 = vmatmul.bf16.vlgmr.msra.gmra.mxu2 %v1045_v34  ;;  %v1053_v29 = vld [vmem:[#allocation1] sm:$0xff] }
 0x234   : > { %2169 = vmatpush.bf16.msrb.mxu2 %v3150_v30  ;;  %2138 = vmatmul.bf16.vlgmr.msra.gmra.mxu3 %v1046_v37  ;;  %v1054_v30 = vld [vmem:[#allocation1 + $0x9] sm:$0xff] }
 0x235   : > { %2182 = vmatpush.bf16.msrb.mxu3 %v3158_v33 }
 0x236   : > { %2144 = vmatpush.bf16.msrb.mxu0 %v3133_v36 }
 0x237   : > { %2157 = vmatpush.bf16.msrb.mxu1 %v3141_v38 }
 0x238   : > { %2170 = vmatpush.bf16.msrb.mxu2 %v3149_v43 }
 0x239   : > { %2183 = vmatpush.bf16.msrb.mxu3 %v3157_v44 }
 0x23a   : > { %2145 = vmatpush.bf16.msrb.mxu0 %v3132_v45 }
 0x23b   : > { %2158 = vmatpush.bf16.msrb.mxu1 %v3140_v46 }
 0x23c   : > { %2171 = vmatpush.bf16.msrb.mxu2 %v3148_v47 }
 0x23d   : > { %2184 = vmatpush.bf16.msrb.mxu3 %v3156_v48 }
 0x23e   : > { %2146 = vmatpush.bf16.msrb.mxu0 %v3131_v18 }
 0x23f   : > { %2159 = vmatpush.bf16.msrb.mxu1 %v3139_v49 }
 0x240   : > { %2172 = vmatpush.bf16.msrb.mxu2 %v3147_v50 }
 0x241   : > { %2185 = vmatpush.bf16.msrb.mxu3 %v3155_v51 }
 0x242   : > { %2147 = vmatpush.bf16.msrb.mxu0 %v3130_v52 }
 0x243   : > { %2160 = vmatpush.bf16.msrb.mxu1 %v3138_v53 }
 0x244   : > { %2173 = vmatpush.bf16.msrb.mxu2 %v3146_v54 }
 0x245   : > { %2186 = vmatpush.bf16.msrb.mxu3 %v3154_v55 }
 0x246   : > { %2148 = vmatpush.bf16.msrb.mxu0 %v3129_v56 }
 0x247   : > { %2161 = vmatpush.bf16.msrb.mxu1 %v3137_v57 }
 0x248   : > { %2174 = vmatpush.bf16.msrb.mxu2 %v3145_v58 }
 0x249   : > { %2187 = vmatpush.bf16.msrb.mxu3 %v3153_v59 }
 0x24a   : > { %2149 = vmatpush.bf16.msrb.mxu0 %v3128_v60 }
 0x24b   : > { %2162 = vmatpush.bf16.msrb.mxu1 %v3136_v61 }
 0x24c   : > { %2175 = vmatpush.bf16.msrb.mxu2 %v3144_v62 }
 0x24d   : > { %2188 = vmatpush.bf16.msrb.mxu3 %v3152_v63 }
 0x24e   : > { %2150 = vmatpush.bf16.msrb.mxu0 %v3127_v0 }
 0x24f   : > { %2163 = vmatpush.bf16.msrb.mxu1 %v3135_v1 }
 0x250   : > { %2176 = vmatpush.bf16.msrb.mxu2 %v3143_v3 }
 0x251   : > { %2189 = vmatpush.bf16.msrb.mxu3 %v3151_v6  ;;  %2151 = vmatmul.bf16.vlgmr.msrb.gmra.mxu0 %v3899_v39 }
 0x252   : > { %2195 = vmatpush.bf16.msra.mxu0 %v3166_v2  ;;  %2164 = vmatmul.bf16.vlgmr.msrb.gmra.mxu1 %v3903_v41 }
 0x253   : > { %2208 = vmatpush.bf16.msra.mxu1 %v3174_v4  ;;  %2177 = vmatmul.bf16.vlgmr.msrb.gmra.mxu2 %v3901_v40 }
 0x254   : > { %2221 = vmatpush.bf16.msra.mxu2 %v3182_v5  ;;  %2190 = vmatmul.bf16.vlgmr.msrb.gmra.mxu3 %v3905_v42 }
 0x256   : > { %2196 = vmatpush.bf16.msra.mxu0 %v3165_v7 }
 0x257   : > { %2209 = vmatpush.bf16.msra.mxu1 %v3173_v8 }
 0x258   : > { %2222 = vmatpush.bf16.msra.mxu2 %v3181_v9 }
 0x25a   : > { %2197 = vmatpush.bf16.msra.mxu0 %v3164_v10 }
 0x25b   : > { %2210 = vmatpush.bf16.msra.mxu1 %v3172_v11 }
 0x25c   : > { %2223 = vmatpush.bf16.msra.mxu2 %v3180_v12 }
 0x25e   : > { %2198 = vmatpush.bf16.msra.mxu0 %v3163_v13 }
 0x25f   : > { %2211 = vmatpush.bf16.msra.mxu1 %v3171_v14 }
 0x260   : > { %2224 = vmatpush.bf16.msra.mxu2 %v3179_v15 }
 0x262   : > { %2199 = vmatpush.bf16.msra.mxu0 %v3162_v16 }
 0x263   : > { %2212 = vmatpush.bf16.msra.mxu1 %v3170_v17 }
 0x264   : > { %2225 = vmatpush.bf16.msra.mxu2 %v3178_v19  ;;  %v721_v19 = vld [vmem:[#allocation3] sm:$0x3] }
 0x266   : > { %2200 = vmatpush.bf16.msra.mxu0 %v3161_v20 }
 0x267   : > { %2213 = vmatpush.bf16.msra.mxu1 %v3169_v21 }
 0x268   : > { %2226 = vmatpush.bf16.msra.mxu2 %v3177_v22 }
 0x26a   : > { %2201 = vmatpush.bf16.msra.mxu0 %v3160_v23 }
 0x26b   : > { %2214 = vmatpush.bf16.msra.mxu1 %v3168_v24 }
 0x26c   : > { %2227 = vmatpush.bf16.msra.mxu2 %v3176_v25 }
 0x26e   : > { %2202 = vmatpush.bf16.msra.mxu0 %v3159_v26  ;;  %v1996_v32 = vpop.f32.mrf.mxu0 }
 0x26f   : > { %2215 = vmatpush.bf16.msra.mxu1 %v3167_v27  ;;  %v2009_v33 = vpop.f32.mrf.mxu1 }
 0x270   : > { %2228 = vmatpush.bf16.msra.mxu2 %v3175_v28  ;;  %v2010_v34 = vadd.f32 %v2009_v33, %v1996_v32 }
 0x271   : > { %2203 = vmatmul.bf16.vlgmr.msra.gmra.mxu0 %v1053_v29 }
 0x272   : > { %2216 = vmatmul.bf16.vlgmr.msra.gmra.mxu1 %v1054_v30 }
 0x273   : > { %2229 = vmatmul.bf16.vlgmr.msra.gmra.mxu2 %v1055_v31 }
 0x276   : > { %v2022_v35 = vpop.f32.mrf.mxu2  ;;  %v1998_v37 = vpop.f32.mrf.mxu0 }
 0x277   : > { %v2023_v36 = vadd.f32 %v2022_v35, %v2010_v34  ;;  %v2035_v38 = vpop.f32.mrf.mxu3  ;;  %v2011_v39 = vpop.f32.mrf.mxu1 }
 0x279   : > { %v2036_v40 = vadd.f32 %v2035_v38, %v2023_v36 }
 0x27e   : > { %v2024_v41 = vpop.f32.mrf.mxu2 }
 0x27f   : > { %v2037_v42 = vpop.f32.mrf.mxu3 }
 0x28e   : > { %v2048_v43 = vpop.f32.mrf.mxu0 }
 0x28f   : > { %v2061_v44 = vpop.f32.mrf.mxu1  ;;  %v2049_v45 = vadd.f32 %v2048_v43, %v2036_v40 }
 0x291   : > { %v2062_v46 = vadd.f32 %v2061_v44, %v2049_v45 }
 0x296   : > { %v2074_v47 = vpop.f32.mrf.mxu2  ;;  %v2050_v49 = vpop.f32.mrf.mxu0 }
 0x297   : > { %v2075_v48 = vadd.f32 %v2074_v47, %v2062_v46  ;;  %v2087_v18 = vpop.f32.mrf.mxu3  ;;  %v2063_v51 = vpop.f32.mrf.mxu1 }
 0x299   : > { %v2088_v50 = vadd.f32 %v2087_v18, %v2075_v48 }
 0x29e   : > { %v2076_v52 = vpop.f32.mrf.mxu2 }
 0x29f   : > { %v2089_v53 = vpop.f32.mrf.mxu3 }
 0x2ae   : > { %v2100_v54 = vpop.f32.mrf.mxu0 }
 0x2af   : > { %v2113_v55 = vpop.f32.mrf.mxu1  ;;  %v2101_v0 = vadd.f32 %v2100_v54, %v2088_v50 }
 0x2b1   : > { %v2114_v5 = vadd.f32 %v2113_v55, %v2101_v0 }
 0x2b6   : > { %v2126_v56 = vpop.f32.mrf.mxu2  ;;  %v2102_v57 = vpop.f32.mrf.mxu0 }
 0x2b7   : > { %v2139_v58 = vpop.f32.mrf.mxu3  ;;  %v2115_v59 = vpop.f32.mrf.mxu1  ;;  %v2127_v6 = vadd.f32 %v2126_v56, %v2114_v5 }
 0x2b9   : > { %v2140_v9 = vadd.f32 %v2139_v58, %v2127_v6 }
 0x2be   : > { %v2128_v60 = vpop.f32.mrf.mxu2 }
 0x2bf   : > { %v2141_v61 = vpop.f32.mrf.mxu3 }
 0x2ce   : > { %v2152_v62 = vpop.f32.mrf.mxu0 }
 0x2cf   : > { %v2165_v63 = vpop.f32.mrf.mxu1  ;;  %v2153_v10 = vadd.f32 %v2152_v62, %v2140_v9 }
 0x2d1   : > { %v2166_v11 = vadd.f32 %v2165_v63, %v2153_v10 }
 0x2d6   : > { %v2178_v1 = vpop.f32.mrf.mxu2  ;;  %v2154_v3 = vpop.f32.mrf.mxu0 }
 0x2d7   : > { %v2191_v2 = vpop.f32.mrf.mxu3  ;;  %v2167_v4 = vpop.f32.mrf.mxu1  ;;  %v2179_v12 = vadd.f32 %v2178_v1, %v2166_v11 }
 0x2d9   : > { %v2192_v14 = vadd.f32 %v2191_v2, %v2179_v12 }
 0x2de   : > { %v2180_v7 = vpop.f32.mrf.mxu2 }
 0x2df   : > { %v2193_v8 = vpop.f32.mrf.mxu3 }
 0x2ee   : > { %v2204_v13 = vpop.f32.mrf.mxu0 }
 0x2ef   : > { %v2217_v15 = vpop.f32.mrf.mxu1  ;;  %v2205_v16 = vadd.f32 %v2204_v13, %v2192_v14 }
 0x2f1   : > { %v2218_v17 = vadd.f32 %v2217_v15, %v2205_v16 }
 0x2f6   : > { %v2230_v20 = vpop.f32.mrf.mxu2  ;;  %v2206_v21 = vpop.f32.mrf.mxu0 }
 0x2f7   : > { %v2231_v22 = vadd.f32 %v2230_v20, %v2218_v17  ;;  %v2219_v23 = vpop.f32.mrf.mxu1 }
 0x2f9   : > { %v2234_v24 = vadd.f32 %v2231_v22, %v721_v19 }
 0x2fa   : > { %2239 = sbr.rel (%p3025_p1) target bundleno = 928 (0x3a0), region = 76 }
 0x2fb   : > { %2235 = vst [vmem:[#allocation3] sm:$0x3] %v2234_v24 }
 0x2fe   : > { %v2232_v25 = vpop.f32.mrf.mxu2 }
 0x2ff   : > { %v2257_v26 = vld [vmem:[%s4032_s5 + $0x78] sm:$0xff]  ;;  %v2256_v27 = vld [vmem:[%s4032_s5 + $0x70] sm:$0xff]  ;;  %v2255_v28 = vld [vmem:[%s4032_s5 + $0x68] sm:$0xff]  ;;  %vm2282_vm1 = vcmask 74752  }
 0x300   : > { %2262 = vmatpush.msra.mxu0 %v2257_v26  ;;  %v2254_v29 = vld [vmem:[%s4032_s5 + $0x60] sm:$0xff]  ;;  %v2253_v30 = vld [vmem:[%s4032_s5 + $0x58] sm:$0xff]  ;;  %v2252_v31 = vld [vmem:[%s4032_s5 + $0x50] sm:$0xff] }
 0x301   : > { %v2251_v32 = vld [vmem:[%s4032_s5 + $0x48] sm:$0xff]  ;;  %v2250_v33 = vld [vmem:[%s4032_s5 + $0x40] sm:$0xff]  ;;  %v2249_v34 = vld [vmem:[%s4032_s5 + $0x38] sm:$0xff] }
 0x302   : > { %2263 = vmatpush.msra.mxu0 %v2256_v27  ;;  %v2248_v35 = vld [vmem:[%s4032_s5 + $0x30] sm:$0xff]  ;;  %v2247_v36 = vld [vmem:[%s4032_s5 + $0x28] sm:$0xff]  ;;  %v2246_v37 = vld [vmem:[%s4032_s5 + $0x20] sm:$0xff] }
 0x303   : > { %v2245_v38 = vld [vmem:[%s4032_s5 + $0x18] sm:$0xff]  ;;  %v2244_v39 = vld [vmem:[%s4032_s5 + $0x10] sm:$0xff]  ;;  %v2240_v40 = vld [vmem:[#allocation3] sm:$0x3] }
 0x304   : > { %2264 = vmatpush.msra.mxu0 %v2255_v28  ;;  %v2243_v41 = vld [vmem:[%s4032_s5 + $0x8] sm:$0xff]  ;;  %v2242_v42 = vld [vmem:[%s4032_s5] sm:$0xff]  ;;  %v2241_v43 = vmax.f32 %v2240_v40, 0.0 }
 0x305   : > { %v3287_v44 = vld [vmem:[#allocation11] ss:$0 sm:$0xff] }
 0x306   : > { %2265 = vmatpush.msra.mxu0 %v2254_v29 }
 0x308   : > { %2266 = vmatpush.msra.mxu0 %v2253_v30 }
 0x30a   : > { %2267 = vmatpush.msra.mxu0 %v2252_v31 }
 0x30c   : > { %2268 = vmatpush.msra.mxu0 %v2251_v32 }
 0x30e   : > { %2269 = vmatpush.msra.mxu0 %v2250_v33 }
 0x310   : > { %2270 = vmatpush.msra.mxu0 %v2249_v34 }
 0x312   : > { %2271 = vmatpush.msra.mxu0 %v2248_v35 }
 0x314   : > { %2272 = vmatpush.msra.mxu0 %v2247_v36 }
 0x316   : > { %2273 = vmatpush.msra.mxu0 %v2246_v37 }
 0x318   : > { %2274 = vmatpush.msra.mxu0 %v2245_v38 }
 0x31a   : > { %2275 = vmatpush.msra.mxu0 %v2244_v39 }
 0x31c   : > { %2276 = vmatpush.msra.mxu0 %v2243_v41 }
 0x31e   : > { %2277 = vmatpush.msra.mxu0 %v2242_v42 }
 0x31f   : > { %2278 = vmatmul.f32.vlgmr.msra.gmra.mxu0 %v2241_v43 }
 0x39c   : > { %v2279_v45 = vpop.f32.mrf.mxu0 }
 0x39d   : > { %v2280_v46 = vadd.f32 %v3287_v44, %v2279_v45 }
 0x39f   : > { %2283 = vst.msk [vmem:[#allocation13] sm:$0x3] %vm2282_vm1, %v2280_v46 }
 0x3a0 PF: > { %p3242_p4 = scmp.eq.s32.totalorder %s3590_s28, 1  ;;  %s3530_s14 = smov [#allocation13]  }
 0x3a1   : > { %s2290_s16 = sshll.u32 %s3530_s14, 4  ;;  %s2292_s8 = sshll.u32 %s4034_s7, 4  ;;  %s2291_s16 = int_to_ptr.vmem [resolvable:$true] %s2290_s16  ;;  %s2293_s8 = int_to_ptr.hbm [resolvable:$true] %s2292_s8 }
 0x3a2   : > { %3213 = dma.vmem_to_hbm [thread:$0]  (%p3242_p4), %s2291_s16, 32, %s2293_s8, [#allocation6]  }
 0x3a3   : > { %3503 = dma.done.wait (%p3242_p4), [#allocation6], 32  }
 0x3a4   : > { %3505 = vsyncadd (%p3242_p4), [#allocation6], 4294967264 }
 0x3a5 PF: > { %p18_p5 = scmp.ge.s32.totalorder %s3636_s15, 4   ;;  %s4039_s24 = smov %s3512_s25 }
 0x3a6   : > { %s4040_s25 = smov %s3516_s26  ;;  %s4041_s26 = smov %s3647_s19 }
 0x3a7   : > { %s4042_s27 = smov %s3636_s15  ;;  %20 = sbr.rel (!%p18_p5) target bundleno = 5 (0x5), region = 138 }
 0x3ac   :  { %2306 = vsyncpa [#allocation5], 1 }
 0x3ad   :  { %2308 = vsyncpa [#allocation5 + $0x1], 1 }
 0x3ae   :  { %2309 = vsyncpa [#allocation8], 1 }
 0x3af   :  { %2310 = vsyncpa [#allocation12], 1 }
 0x3b0   :  { %2311 = vsyncpa [#allocation6], 1 }
 0x3b1   :  { %2313 = vsyncpa [#allocation6 + $0x1], 1 }

</bundles_post_ra>
